<compile_context>
chip_gen: v5e
topology: v5e:2x2
jax: 0.10.0
libtpu: 0.0.40
codegen_flags: <defaults>
</compile_context>

<pallas_src>
import jax
import jax.numpy as jnp
from jax.experimental import pallas as pl
from jax.experimental.pallas import tpu as pltpu

INPUT_SIZE = 18
HIDDEN_SIZE = 12
BATCH_BLOCK = 8          # sublane-aligned batch tile handled per grid step


def _make_gru_kernel(T, H):
    BB = BATCH_BLOCK
    I = INPUT_SIZE
    bf16 = jnp.bfloat16

    def kernel(x_ref, wih0_ref, whh0_ref, b0_ref, bhh0n_ref,
               wi1_ref, wh1_ref, brz1_ref, bi1n_ref, bh1n_ref,
               wfc_ref, bfc_ref, out_ref, h1s_ref):
        # ---- hoisted weight loads (bf16 MXU operands) & bias broadcasts ----
        whh0 = whh0_ref[...]                                  # (H, 3H) bf16
        wi1 = wi1_ref[...]                                    # (H, 3H) bf16
        wh1 = wh1_ref[...]                                    # (H, 3H) bf16
        bhh0n = jnp.broadcast_to(bhh0n_ref[...], (BB, H))     # f32
        brz1 = jnp.broadcast_to(brz1_ref[...], (BB, 2 * H))
        bi1n = jnp.broadcast_to(bi1n_ref[...], (BB, H))
        bh1n = jnp.broadcast_to(bh1n_ref[...], (BB, H))

        # ---- non-recurrent work: layer-0 input projection for ALL steps ----
        x2d = x_ref[...].reshape(T * BB, I).astype(bf16)
        gi0_all = (jnp.dot(x2d, wih0_ref[...],
                           preferred_element_type=jnp.float32)
                   + b0_ref[...]).reshape(T, BB, 3 * H)       # (T, BB, 3H) f32

        h0 = jnp.zeros((BB, H), jnp.float32)
        h1 = jnp.zeros((BB, H), jnp.float32)

        # Fully unrolled: T is small and static.
        # TODO(synk): for T in the hundreds switch to lax.fori_loop(unroll=k)
        # or a time-chunked grid (h carried in scratch) + vmem_limit_bytes.
        for t in range(T):
            pre0 = gi0_all[t]                                 # (BB, 3H) aligned slab

            # Both previous-state matmuls issued up front: gh1 only depends on
            # h1(t-1), so it runs off the critical chain while layer-0 gate
            # nonlinearities are being evaluated.
            gh0 = jnp.dot(h0.astype(bf16), whh0,
                          preferred_element_type=jnp.float32)  # (BB, 3H)
            gh1 = jnp.dot(h1.astype(bf16), wh1,
                          preferred_element_type=jnp.float32)  # (BB, 3H)

            # ----- layer 0 (fused r/z sigmoid: one EUP push) -----
            rz0 = jax.nn.sigmoid(pre0[:, :2 * H] + gh0[:, :2 * H])
            r0 = rz0[:, :H]
            z0 = rz0[:, H:]
            n0 = jnp.tanh(pre0[:, 2 * H:] + r0 * (gh0[:, 2 * H:] + bhh0n))
            h0 = (1.0 - z0) * n0 + z0 * h0

            # ----- layer 1: only the h0-dependent matmul is on the chain -----
            gi1 = jnp.dot(h0.astype(bf16), wi1,
                          preferred_element_type=jnp.float32)  # (BB, 3H)
            rz1 = jax.nn.sigmoid(gi1[:, :2 * H] + gh1[:, :2 * H] + brz1)
            r1 = rz1[:, :H]
            z1 = rz1[:, H:]
            n1 = jnp.tanh(gi1[:, 2 * H:] + bi1n + r1 * (gh1[:, 2 * H:] + bh1n))
            h1 = (1.0 - z1) * n1 + z1 * h1

            h1s_ref[t] = h1                                   # aligned slab store

        # ---- fc head: VPU multiply + lane reduce (no N=1 MXU matmul) ----
        out_ref[...] = (jnp.sum(h1s_ref[...] * wfc_ref[...],
                                axis=-1, keepdims=True)
                        + bfc_ref[...])                       # (T, BB, 1)

    return kernel


def gru_forward(x, params):
    """x: (B, T, INPUT_SIZE) float32 -> (B, T, 1) float32."""
    B, T, I = x.shape
    H = HIDDEN_SIZE
    BB = BATCH_BLOCK
    assert I == INPUT_SIZE
    x = x.astype(jnp.float32)

    # Time-major + batch padded to a multiple of 8 so every per-step slab /
    # store inside the kernel is sublane-aligned; padded rows are discarded.
    Bp = ((B + BB - 1) // BB) * BB
    x_tm = jnp.transpose(x, (1, 0, 2))                        # (T, B, I)
    if Bp != B:
        x_tm = jnp.pad(x_tm, ((0, 0), (0, Bp - B), (0, 0)))

    # ---- weight preprocessing (plain XLA, outside the serial loop) ----
    bf16 = jnp.bfloat16
    wih0_t = params["wih0"].T.astype(bf16)                    # (I, 3H)
    whh0_t = params["whh0"].T.astype(bf16)                    # (H, 3H)
    wi1_t = params["wih1"].T.astype(bf16)                     # (H, 3H)
    wh1_t = params["whh1"].T.astype(bf16)                     # (H, 3H)
    # fold bih0 + r/z parts of bhh0 into the precomputed gi0 bias
    b0 = params["bih0"] + jnp.concatenate(
        [params["bhh0"][:2 * H], jnp.zeros((H,), jnp.float32)])
    bhh0n = params["bhh0"][2 * H:]                            # n-gate hidden bias
    brz1 = params["bih1"][:2 * H] + params["bhh1"][:2 * H]
    bi1n = params["bih1"][2 * H:]
    bh1n = params["bhh1"][2 * H:]

    ins = [
        x_tm,
        wih0_t, whh0_t, b0[None, :], bhh0n[None, :],
        wi1_t, wh1_t, brz1[None, :], bi1n[None, :], bh1n[None, :],
        params["wfc"], params["bfc"].reshape(1, 1),
    ]

    def _full(a):                                             # whole-array VMEM block
        return pl.BlockSpec(a.shape, lambda b: (0, 0))

    in_specs = ([pl.BlockSpec((T, BB, I), lambda b: (0, b, 0))]
                + [_full(a) for a in ins[1:]])
    out_specs = pl.BlockSpec((T, BB, 1), lambda b: (0, b, 0))

    out = pl.pallas_call(
        _make_gru_kernel(T, H),
        out_shape=jax.ShapeDtypeStruct((T, Bp, 1), jnp.float32),
        grid_spec=pltpu.PrefetchScalarGridSpec(
            num_scalar_prefetch=0,
            grid=(Bp // BB,),                                 # batch-block axis
            in_specs=in_specs,
            out_specs=out_specs,
            scratch_shapes=[pltpu.VMEM((T, BB, H), jnp.float32)]),
        # Batch is embarrassingly parallel -> megacore split on v7x when B grows.
        compiler_params=pltpu.CompilerParams(
            dimension_semantics=("parallel",)),
    )(*ins)
    # TODO(synk): if T ever scales up, add a time-chunked ("arbitrary") grid
    # axis with BlockSpecs over T (h carried in scratch) and set
    # vmem_limit_bytes explicitly so lane-padded VMEM residency stays bounded.
    return jnp.transpose(out, (1, 0, 2))[:B]                  # (B, T, 1)


def gru_reference(x, params):
    """Pure-JAX f32 reference of the PyTorch forward pass (for validation)."""
    H = HIDDEN_SIZE

    def cell(x_t, h, wih, whh, bih, bhh):
        gi = x_t @ wih.T + bih
        gh = h @ whh.T + bhh
        r = jax.nn.sigmoid(gi[:, :H] + gh[:, :H])
        z = jax.nn.sigmoid(gi[:, H:2 * H] + gh[:, H:2 * H])
        n = jnp.tanh(gi[:, 2 * H:] + r * gh[:, 2 * H:])
        return (1.0 - z) * n + z * h

    B, T, _ = x.shape
    h0 = jnp.zeros((B, H), jnp.float32)
    h1 = jnp.zeros((B, H), jnp.float32)
    outs = []
    for t in range(T):
        h0 = cell(x[:, t], h0, params["wih0"], params["whh0"],
                  params["bih0"], params["bhh0"])
        h1 = cell(h0, h1, params["wih1"], params["whh1"],
                  params["bih1"], params["bhh1"])
        outs.append(h1 @ params["wfc"].T + params["bfc"])
    return jnp.stack(outs, axis=1)


def init_params(key):
    """Deterministic init mirroring PyTorch's uniform(-1/sqrt(H), 1/sqrt(H))."""
    H, I = HIDDEN_SIZE, INPUT_SIZE
    k = 1.0 / jnp.sqrt(jnp.float32(H))
    keys = jax.random.split(key, 10)
    u = lambda kk, shape: jax.random.uniform(kk, shape, jnp.float32, -k, k)
    return {
        "wih0": u(keys[0], (3 * H, I)),
        "whh0": u(keys[1], (3 * H, H)),
        "bih0": u(keys[2], (3 * H,)),
        "bhh0": u(keys[3], (3 * H,)),
        "wih1": u(keys[4], (3 * H, H)),
        "whh1": u(keys[5], (3 * H, H)),
        "bih1": u(keys[6], (3 * H,)),
        "bhh1": u(keys[7], (3 * H,)),
        "wfc": u(keys[8], (1, H)),
        "bfc": u(keys[9], (1,)),
    }


if __name__ == "__main__":
    key = jax.random.PRNGKey(0)
    k_param, k_x = jax.random.split(key)
    params = init_params(k_param)

    B, T = 2, 8
    x = jax.random.normal(k_x, (B, T, INPUT_SIZE), jnp.float32)

    out = gru_forward(x, params)
    out = jax.block_until_ready(out)

    ref = gru_reference(x, params)
    assert out.shape == (B, T, 1), out.shape
    # bf16 MXU operands (with f32 accumulation) are an intentional precision
    # change per the perf review; 2e-2 comfortably covers it at these scales.
    assert jnp.allclose(out, ref, atol=2e-2, rtol=2e-2), (
        float(jnp.max(jnp.abs(out - ref))))
    print("KERNEL_OK")
</pallas_src>

<mosaic_0001>
module attributes {stable_mosaic.version = 11 : i64} {
  func.func @kernel(%arg0: i32, %arg1: memref<8x8x18xf32, #tpu.memory_space<vmem>>, %arg2: memref<18x36xbf16, #tpu.memory_space<vmem>>, %arg3: memref<12x36xbf16, #tpu.memory_space<vmem>>, %arg4: memref<1x36xf32, #tpu.memory_space<vmem>>, %arg5: memref<1x12xf32, #tpu.memory_space<vmem>>, %arg6: memref<12x36xbf16, #tpu.memory_space<vmem>>, %arg7: memref<12x36xbf16, #tpu.memory_space<vmem>>, %arg8: memref<1x24xf32, #tpu.memory_space<vmem>>, %arg9: memref<1x12xf32, #tpu.memory_space<vmem>>, %arg10: memref<1x12xf32, #tpu.memory_space<vmem>>, %arg11: memref<1x12xf32, #tpu.memory_space<vmem>>, %arg12: memref<1x1xf32, #tpu.memory_space<vmem>>, %arg13: memref<8x8x1xf32, #tpu.memory_space<vmem>>, %arg14: memref<8x8x12xf32, #tpu.memory_space<vmem>>) attributes {dimension_semantics = [#tpu.dimension_semantics<parallel>], iteration_bounds = array<i64: 1>, scalar_prefetch = 0 : i64, scratch_operands = 1 : i64, tpu.core_type = #tpu.core_type<tc>, window_params = [{transform_indices = @transform_0, window_bounds = array<i64: 8, 8, 18>}, {pipeline_mode = #tpu.pipeline_mode<synchronous>, transform_indices = @transform_1, window_bounds = array<i64: 18, 36>}, {pipeline_mode = #tpu.pipeline_mode<synchronous>, transform_indices = @transform_2, window_bounds = array<i64: 12, 36>}, {pipeline_mode = #tpu.pipeline_mode<synchronous>, transform_indices = @transform_3, window_bounds = array<i64: 1, 36>}, {pipeline_mode = #tpu.pipeline_mode<synchronous>, transform_indices = @transform_4, window_bounds = array<i64: 1, 12>}, {pipeline_mode = #tpu.pipeline_mode<synchronous>, transform_indices = @transform_5, window_bounds = array<i64: 12, 36>}, {pipeline_mode = #tpu.pipeline_mode<synchronous>, transform_indices = @transform_6, window_bounds = array<i64: 12, 36>}, {pipeline_mode = #tpu.pipeline_mode<synchronous>, transform_indices = @transform_7, window_bounds = array<i64: 1, 24>}, {pipeline_mode = #tpu.pipeline_mode<synchronous>, transform_indices = @transform_8, window_bounds = array<i64: 1, 12>}, {pipeline_mode = #tpu.pipeline_mode<synchronous>, transform_indices = @transform_9, window_bounds = array<i64: 1, 12>}, {pipeline_mode = #tpu.pipeline_mode<synchronous>, transform_indices = @transform_10, window_bounds = array<i64: 1, 12>}, {pipeline_mode = #tpu.pipeline_mode<synchronous>, transform_indices = @transform_11, window_bounds = array<i64: 1, 1>}, {transform_indices = @transform_12, window_bounds = array<i64: 8, 8, 1>}]} {
    %c0 = arith.constant 0 : index
    %c0_0 = arith.constant 0 : index
    %0 = vector.load %arg3[%c0, %c0_0] : memref<12x36xbf16, #tpu.memory_space<vmem>>, vector<12x36xbf16>
    %c0_1 = arith.constant 0 : index
    %c0_2 = arith.constant 0 : index
    %1 = vector.load %arg6[%c0_1, %c0_2] : memref<12x36xbf16, #tpu.memory_space<vmem>>, vector<12x36xbf16>
    %c0_3 = arith.constant 0 : index
    %c0_4 = arith.constant 0 : index
    %2 = vector.load %arg7[%c0_3, %c0_4] : memref<12x36xbf16, #tpu.memory_space<vmem>>, vector<12x36xbf16>
    %c0_5 = arith.constant 0 : index
    %c0_6 = arith.constant 0 : index
    %3 = vector.load %arg5[%c0_5, %c0_6] : memref<1x12xf32, #tpu.memory_space<vmem>>, vector<1x12xf32>
    %4 = vector.shape_cast %3 : vector<1x12xf32> to vector<1x12xf32>
    %5 = vector.broadcast %4 : vector<1x12xf32> to vector<8x12xf32>
    %c0_7 = arith.constant 0 : index
    %c0_8 = arith.constant 0 : index
    %6 = vector.load %arg8[%c0_7, %c0_8] : memref<1x24xf32, #tpu.memory_space<vmem>>, vector<1x24xf32>
    %7 = vector.shape_cast %6 : vector<1x24xf32> to vector<1x24xf32>
    %8 = vector.broadcast %7 : vector<1x24xf32> to vector<8x24xf32>
    %c0_9 = arith.constant 0 : index
    %c0_10 = arith.constant 0 : index
    %9 = vector.load %arg9[%c0_9, %c0_10] : memref<1x12xf32, #tpu.memory_space<vmem>>, vector<1x12xf32>
    %10 = vector.shape_cast %9 : vector<1x12xf32> to vector<1x12xf32>
    %11 = vector.broadcast %10 : vector<1x12xf32> to vector<8x12xf32>
    %c0_11 = arith.constant 0 : index
    %c0_12 = arith.constant 0 : index
    %12 = vector.load %arg10[%c0_11, %c0_12] : memref<1x12xf32, #tpu.memory_space<vmem>>, vector<1x12xf32>
    %13 = vector.shape_cast %12 : vector<1x12xf32> to vector<1x12xf32>
    %14 = vector.broadcast %13 : vector<1x12xf32> to vector<8x12xf32>
    %c0_13 = arith.constant 0 : index
    %c0_14 = arith.constant 0 : index
    %c0_15 = arith.constant 0 : index
    %15 = vector.load %arg1[%c0_13, %c0_14, %c0_15] : memref<8x8x18xf32, #tpu.memory_space<vmem>>, vector<8x8x18xf32>
    %16 = vector.shape_cast %15 : vector<8x8x18xf32> to vector<64x18xf32>
    %17 = arith.truncf %16 : vector<64x18xf32> to vector<64x18xbf16>
    %c0_16 = arith.constant 0 : index
    %c0_17 = arith.constant 0 : index
    %18 = vector.load %arg2[%c0_16, %c0_17] : memref<18x36xbf16, #tpu.memory_space<vmem>>, vector<18x36xbf16>
    %cst = arith.constant dense<0.000000e+00> : vector<64x36xf32>
    %19 = tpu.matmul %17, %18, %cst {dimension_numbers = #tpu.dot_dimension_numbers<[1], [0], [0], [1], [0, 0, 1, 1], [], []>} : vector<64x18xbf16>, vector<18x36xbf16>, vector<64x36xf32> -> vector<64x36xf32>
    %c0_18 = arith.constant 0 : index
    %c0_19 = arith.constant 0 : index
    %20 = vector.load %arg4[%c0_18, %c0_19] : memref<1x36xf32, #tpu.memory_space<vmem>>, vector<1x36xf32>
    %21 = vector.broadcast %20 : vector<1x36xf32> to vector<64x36xf32>
    %22 = arith.addf %19, %21 : vector<64x36xf32>
    %23 = vector.shape_cast %22 : vector<64x36xf32> to vector<8x8x36xf32>
    %cst_20 = arith.constant 0.000000e+00 : f32
    %24 = vector.broadcast %cst_20 : f32 to vector<8x12xf32>
    %cst_21 = arith.constant 0.000000e+00 : f32
    %25 = vector.broadcast %cst_21 : f32 to vector<8x12xf32>
    %26 = vector.extract_strided_slice %23 {offsets = [0, 0, 0], sizes = [1, 8, 36], strides = [1, 1, 1]} : vector<8x8x36xf32> to vector<1x8x36xf32>
    %27 = vector.shape_cast %26 : vector<1x8x36xf32> to vector<8x36xf32>
    %28 = arith.truncf %24 : vector<8x12xf32> to vector<8x12xbf16>
    %cst_22 = arith.constant dense<0.000000e+00> : vector<8x36xf32>
    %29 = tpu.matmul %28, %0, %cst_22 {dimension_numbers = #tpu.dot_dimension_numbers<[1], [0], [0], [1], [0, 0, 1, 1], [], []>} : vector<8x12xbf16>, vector<12x36xbf16>, vector<8x36xf32> -> vector<8x36xf32>
    %30 = arith.truncf %25 : vector<8x12xf32> to vector<8x12xbf16>
    %cst_23 = arith.constant dense<0.000000e+00> : vector<8x36xf32>
    %31 = tpu.matmul %30, %2, %cst_23 {dimension_numbers = #tpu.dot_dimension_numbers<[1], [0], [0], [1], [0, 0, 1, 1], [], []>} : vector<8x12xbf16>, vector<12x36xbf16>, vector<8x36xf32> -> vector<8x36xf32>
    %32 = vector.extract_strided_slice %27 {offsets = [0, 0], sizes = [8, 24], strides = [1, 1]} : vector<8x36xf32> to vector<8x24xf32>
    %33 = vector.extract_strided_slice %29 {offsets = [0, 0], sizes = [8, 24], strides = [1, 1]} : vector<8x36xf32> to vector<8x24xf32>
    %34 = arith.addf %32, %33 : vector<8x24xf32>
    %35 = arith.negf %34 : vector<8x24xf32>
    %36 = math.exp %35 : vector<8x24xf32>
    %cst_24 = arith.constant 1.000000e+00 : f32
    %37 = vector.broadcast %cst_24 : f32 to vector<8x24xf32>
    %38 = arith.addf %37, %36 : vector<8x24xf32>
    %39 = arith.divf %37, %38 : vector<8x24xf32>
    %40 = vector.extract_strided_slice %39 {offsets = [0, 0], sizes = [8, 12], strides = [1, 1]} : vector<8x24xf32> to vector<8x12xf32>
    %41 = vector.extract_strided_slice %39 {offsets = [0, 12], sizes = [8, 12], strides = [1, 1]} : vector<8x24xf32> to vector<8x12xf32>
    %42 = vector.extract_strided_slice %27 {offsets = [0, 24], sizes = [8, 12], strides = [1, 1]} : vector<8x36xf32> to vector<8x12xf32>
    %43 = vector.extract_strided_slice %29 {offsets = [0, 24], sizes = [8, 12], strides = [1, 1]} : vector<8x36xf32> to vector<8x12xf32>
    %44 = arith.addf %43, %5 : vector<8x12xf32>
    %45 = arith.mulf %40, %44 : vector<8x12xf32>
    %46 = arith.addf %42, %45 : vector<8x12xf32>
    %47 = math.tanh %46 : vector<8x12xf32>
    %cst_25 = arith.constant 1.000000e+00 : f32
    %48 = vector.broadcast %cst_25 : f32 to vector<8x12xf32>
    %49 = arith.subf %48, %41 : vector<8x12xf32>
    %50 = arith.mulf %49, %47 : vector<8x12xf32>
    %51 = arith.mulf %41, %24 : vector<8x12xf32>
    %52 = arith.addf %50, %51 : vector<8x12xf32>
    %53 = arith.truncf %52 : vector<8x12xf32> to vector<8x12xbf16>
    %cst_26 = arith.constant dense<0.000000e+00> : vector<8x36xf32>
    %54 = tpu.matmul %53, %1, %cst_26 {dimension_numbers = #tpu.dot_dimension_numbers<[1], [0], [0], [1], [0, 0, 1, 1], [], []>} : vector<8x12xbf16>, vector<12x36xbf16>, vector<8x36xf32> -> vector<8x36xf32>
    %55 = vector.extract_strided_slice %54 {offsets = [0, 0], sizes = [8, 24], strides = [1, 1]} : vector<8x36xf32> to vector<8x24xf32>
    %56 = vector.extract_strided_slice %31 {offsets = [0, 0], sizes = [8, 24], strides = [1, 1]} : vector<8x36xf32> to vector<8x24xf32>
    %57 = arith.addf %55, %56 : vector<8x24xf32>
    %58 = arith.addf %57, %8 : vector<8x24xf32>
    %59 = arith.negf %58 : vector<8x24xf32>
    %60 = math.exp %59 : vector<8x24xf32>
    %cst_27 = arith.constant 1.000000e+00 : f32
    %61 = vector.broadcast %cst_27 : f32 to vector<8x24xf32>
    %62 = arith.addf %61, %60 : vector<8x24xf32>
    %63 = arith.divf %61, %62 : vector<8x24xf32>
    %64 = vector.extract_strided_slice %63 {offsets = [0, 0], sizes = [8, 12], strides = [1, 1]} : vector<8x24xf32> to vector<8x12xf32>
    %65 = vector.extract_strided_slice %63 {offsets = [0, 12], sizes = [8, 12], strides = [1, 1]} : vector<8x24xf32> to vector<8x12xf32>
    %66 = vector.extract_strided_slice %54 {offsets = [0, 24], sizes = [8, 12], strides = [1, 1]} : vector<8x36xf32> to vector<8x12xf32>
    %67 = arith.addf %66, %11 : vector<8x12xf32>
    %68 = vector.extract_strided_slice %31 {offsets = [0, 24], sizes = [8, 12], strides = [1, 1]} : vector<8x36xf32> to vector<8x12xf32>
    %69 = arith.addf %68, %14 : vector<8x12xf32>
    %70 = arith.mulf %64, %69 : vector<8x12xf32>
    %71 = arith.addf %67, %70 : vector<8x12xf32>
    %72 = math.tanh %71 : vector<8x12xf32>
    %cst_28 = arith.constant 1.000000e+00 : f32
    %73 = vector.broadcast %cst_28 : f32 to vector<8x12xf32>
    %74 = arith.subf %73, %65 : vector<8x12xf32>
    %75 = arith.mulf %74, %72 : vector<8x12xf32>
    %76 = arith.mulf %65, %25 : vector<8x12xf32>
    %77 = arith.addf %75, %76 : vector<8x12xf32>
    %c0_29 = arith.constant 0 : index
    %c0_30 = arith.constant 0 : index
    %c0_31 = arith.constant 0 : index
    %78 = vector.load %arg14[%c0_29, %c0_30, %c0_31] : memref<8x8x12xf32, #tpu.memory_space<vmem>>, vector<1x8x12xf32>
    %79 = vector.shape_cast %78 : vector<1x8x12xf32> to vector<8x12xf32>
    %80 = vector.shape_cast %77 : vector<8x12xf32> to vector<1x8x12xf32>
    tpu.vector_store %arg14[%c0_29, %c0_30, %c0_31], %80 {strides = array<i32>} : memref<8x8x12xf32, #tpu.memory_space<vmem>>, vector<1x8x12xf32>,
    %81 = vector.extract_strided_slice %23 {offsets = [1, 0, 0], sizes = [1, 8, 36], strides = [1, 1, 1]} : vector<8x8x36xf32> to vector<1x8x36xf32>
    %82 = vector.shape_cast %81 : vector<1x8x36xf32> to vector<8x36xf32>
    %83 = arith.truncf %52 : vector<8x12xf32> to vector<8x12xbf16>
    %cst_32 = arith.constant dense<0.000000e+00> : vector<8x36xf32>
    %84 = tpu.matmul %83, %0, %cst_32 {dimension_numbers = #tpu.dot_dimension_numbers<[1], [0], [0], [1], [0, 0, 1, 1], [], []>} : vector<8x12xbf16>, vector<12x36xbf16>, vector<8x36xf32> -> vector<8x36xf32>
    %85 = arith.truncf %77 : vector<8x12xf32> to vector<8x12xbf16>
    %cst_33 = arith.constant dense<0.000000e+00> : vector<8x36xf32>
    %86 = tpu.matmul %85, %2, %cst_33 {dimension_numbers = #tpu.dot_dimension_numbers<[1], [0], [0], [1], [0, 0, 1, 1], [], []>} : vector<8x12xbf16>, vector<12x36xbf16>, vector<8x36xf32> -> vector<8x36xf32>
    %87 = vector.extract_strided_slice %82 {offsets = [0, 0], sizes = [8, 24], strides = [1, 1]} : vector<8x36xf32> to vector<8x24xf32>
    %88 = vector.extract_strided_slice %84 {offsets = [0, 0], sizes = [8, 24], strides = [1, 1]} : vector<8x36xf32> to vector<8x24xf32>
    %89 = arith.addf %87, %88 : vector<8x24xf32>
    %90 = arith.negf %89 : vector<8x24xf32>
    %91 = math.exp %90 : vector<8x24xf32>
    %cst_34 = arith.constant 1.000000e+00 : f32
    %92 = vector.broadcast %cst_34 : f32 to vector<8x24xf32>
    %93 = arith.addf %92, %91 : vector<8x24xf32>
    %94 = arith.divf %92, %93 : vector<8x24xf32>
    %95 = vector.extract_strided_slice %94 {offsets = [0, 0], sizes = [8, 12], strides = [1, 1]} : vector<8x24xf32> to vector<8x12xf32>
    %96 = vector.extract_strided_slice %94 {offsets = [0, 12], sizes = [8, 12], strides = [1, 1]} : vector<8x24xf32> to vector<8x12xf32>
    %97 = vector.extract_strided_slice %82 {offsets = [0, 24], sizes = [8, 12], strides = [1, 1]} : vector<8x36xf32> to vector<8x12xf32>
    %98 = vector.extract_strided_slice %84 {offsets = [0, 24], sizes = [8, 12], strides = [1, 1]} : vector<8x36xf32> to vector<8x12xf32>
    %99 = arith.addf %98, %5 : vector<8x12xf32>
    %100 = arith.mulf %95, %99 : vector<8x12xf32>
    %101 = arith.addf %97, %100 : vector<8x12xf32>
    %102 = math.tanh %101 : vector<8x12xf32>
    %cst_35 = arith.constant 1.000000e+00 : f32
    %103 = vector.broadcast %cst_35 : f32 to vector<8x12xf32>
    %104 = arith.subf %103, %96 : vector<8x12xf32>
    %105 = arith.mulf %104, %102 : vector<8x12xf32>
    %106 = arith.mulf %96, %52 : vector<8x12xf32>
    %107 = arith.addf %105, %106 : vector<8x12xf32>
    %108 = arith.truncf %107 : vector<8x12xf32> to vector<8x12xbf16>
    %cst_36 = arith.constant dense<0.000000e+00> : vector<8x36xf32>
    %109 = tpu.matmul %108, %1, %cst_36 {dimension_numbers = #tpu.dot_dimension_numbers<[1], [0], [0], [1], [0, 0, 1, 1], [], []>} : vector<8x12xbf16>, vector<12x36xbf16>, vector<8x36xf32> -> vector<8x36xf32>
    %110 = vector.extract_strided_slice %109 {offsets = [0, 0], sizes = [8, 24], strides = [1, 1]} : vector<8x36xf32> to vector<8x24xf32>
    %111 = vector.extract_strided_slice %86 {offsets = [0, 0], sizes = [8, 24], strides = [1, 1]} : vector<8x36xf32> to vector<8x24xf32>
    %112 = arith.addf %110, %111 : vector<8x24xf32>
    %113 = arith.addf %112, %8 : vector<8x24xf32>
    %114 = arith.negf %113 : vector<8x24xf32>
    %115 = math.exp %114 : vector<8x24xf32>
    %cst_37 = arith.constant 1.000000e+00 : f32
    %116 = vector.broadcast %cst_37 : f32 to vector<8x24xf32>
    %117 = arith.addf %116, %115 : vector<8x24xf32>
    %118 = arith.divf %116, %117 : vector<8x24xf32>
    %119 = vector.extract_strided_slice %118 {offsets = [0, 0], sizes = [8, 12], strides = [1, 1]} : vector<8x24xf32> to vector<8x12xf32>
    %120 = vector.extract_strided_slice %118 {offsets = [0, 12], sizes = [8, 12], strides = [1, 1]} : vector<8x24xf32> to vector<8x12xf32>
    %121 = vector.extract_strided_slice %109 {offsets = [0, 24], sizes = [8, 12], strides = [1, 1]} : vector<8x36xf32> to vector<8x12xf32>
    %122 = arith.addf %121, %11 : vector<8x12xf32>
    %123 = vector.extract_strided_slice %86 {offsets = [0, 24], sizes = [8, 12], strides = [1, 1]} : vector<8x36xf32> to vector<8x12xf32>
    %124 = arith.addf %123, %14 : vector<8x12xf32>
    %125 = arith.mulf %119, %124 : vector<8x12xf32>
    %126 = arith.addf %122, %125 : vector<8x12xf32>
    %127 = math.tanh %126 : vector<8x12xf32>
    %cst_38 = arith.constant 1.000000e+00 : f32
    %128 = vector.broadcast %cst_38 : f32 to vector<8x12xf32>
    %129 = arith.subf %128, %120 : vector<8x12xf32>
    %130 = arith.mulf %129, %127 : vector<8x12xf32>
    %131 = arith.mulf %120, %77 : vector<8x12xf32>
    %132 = arith.addf %130, %131 : vector<8x12xf32>
    %c1 = arith.constant 1 : index
    %c0_39 = arith.constant 0 : index
    %c0_40 = arith.constant 0 : index
    %133 = vector.load %arg14[%c1, %c0_39, %c0_40] : memref<8x8x12xf32, #tpu.memory_space<vmem>>, vector<1x8x12xf32>
    %134 = vector.shape_cast %133 : vector<1x8x12xf32> to vector<8x12xf32>
    %135 = vector.shape_cast %132 : vector<8x12xf32> to vector<1x8x12xf32>
    tpu.vector_store %arg14[%c1, %c0_39, %c0_40], %135 {strides = array<i32>} : memref<8x8x12xf32, #tpu.memory_space<vmem>>, vector<1x8x12xf32>,
    %136 = vector.extract_strided_slice %23 {offsets = [2, 0, 0], sizes = [1, 8, 36], strides = [1, 1, 1]} : vector<8x8x36xf32> to vector<1x8x36xf32>
    %137 = vector.shape_cast %136 : vector<1x8x36xf32> to vector<8x36xf32>
    %138 = arith.truncf %107 : vector<8x12xf32> to vector<8x12xbf16>
    %cst_41 = arith.constant dense<0.000000e+00> : vector<8x36xf32>
    %139 = tpu.matmul %138, %0, %cst_41 {dimension_numbers = #tpu.dot_dimension_numbers<[1], [0], [0], [1], [0, 0, 1, 1], [], []>} : vector<8x12xbf16>, vector<12x36xbf16>, vector<8x36xf32> -> vector<8x36xf32>
    %140 = arith.truncf %132 : vector<8x12xf32> to vector<8x12xbf16>
    %cst_42 = arith.constant dense<0.000000e+00> : vector<8x36xf32>
    %141 = tpu.matmul %140, %2, %cst_42 {dimension_numbers = #tpu.dot_dimension_numbers<[1], [0], [0], [1], [0, 0, 1, 1], [], []>} : vector<8x12xbf16>, vector<12x36xbf16>, vector<8x36xf32> -> vector<8x36xf32>
    %142 = vector.extract_strided_slice %137 {offsets = [0, 0], sizes = [8, 24], strides = [1, 1]} : vector<8x36xf32> to vector<8x24xf32>
    %143 = vector.extract_strided_slice %139 {offsets = [0, 0], sizes = [8, 24], strides = [1, 1]} : vector<8x36xf32> to vector<8x24xf32>
    %144 = arith.addf %142, %143 : vector<8x24xf32>
    %145 = arith.negf %144 : vector<8x24xf32>
    %146 = math.exp %145 : vector<8x24xf32>
    %cst_43 = arith.constant 1.000000e+00 : f32
    %147 = vector.broadcast %cst_43 : f32 to vector<8x24xf32>
    %148 = arith.addf %147, %146 : vector<8x24xf32>
    %149 = arith.divf %147, %148 : vector<8x24xf32>
    %150 = vector.extract_strided_slice %149 {offsets = [0, 0], sizes = [8, 12], strides = [1, 1]} : vector<8x24xf32> to vector<8x12xf32>
    %151 = vector.extract_strided_slice %149 {offsets = [0, 12], sizes = [8, 12], strides = [1, 1]} : vector<8x24xf32> to vector<8x12xf32>
    %152 = vector.extract_strided_slice %137 {offsets = [0, 24], sizes = [8, 12], strides = [1, 1]} : vector<8x36xf32> to vector<8x12xf32>
    %153 = vector.extract_strided_slice %139 {offsets = [0, 24], sizes = [8, 12], strides = [1, 1]} : vector<8x36xf32> to vector<8x12xf32>
    %154 = arith.addf %153, %5 : vector<8x12xf32>
    %155 = arith.mulf %150, %154 : vector<8x12xf32>
    %156 = arith.addf %152, %155 : vector<8x12xf32>
    %157 = math.tanh %156 : vector<8x12xf32>
    %cst_44 = arith.constant 1.000000e+00 : f32
    %158 = vector.broadcast %cst_44 : f32 to vector<8x12xf32>
    %159 = arith.subf %158, %151 : vector<8x12xf32>
    %160 = arith.mulf %159, %157 : vector<8x12xf32>
    %161 = arith.mulf %151, %107 : vector<8x12xf32>
    %162 = arith.addf %160, %161 : vector<8x12xf32>
    %163 = arith.truncf %162 : vector<8x12xf32> to vector<8x12xbf16>
    %cst_45 = arith.constant dense<0.000000e+00> : vector<8x36xf32>
    %164 = tpu.matmul %163, %1, %cst_45 {dimension_numbers = #tpu.dot_dimension_numbers<[1], [0], [0], [1], [0, 0, 1, 1], [], []>} : vector<8x12xbf16>, vector<12x36xbf16>, vector<8x36xf32> -> vector<8x36xf32>
    %165 = vector.extract_strided_slice %164 {offsets = [0, 0], sizes = [8, 24], strides = [1, 1]} : vector<8x36xf32> to vector<8x24xf32>
    %166 = vector.extract_strided_slice %141 {offsets = [0, 0], sizes = [8, 24], strides = [1, 1]} : vector<8x36xf32> to vector<8x24xf32>
    %167 = arith.addf %165, %166 : vector<8x24xf32>
    %168 = arith.addf %167, %8 : vector<8x24xf32>
    %169 = arith.negf %168 : vector<8x24xf32>
    %170 = math.exp %169 : vector<8x24xf32>
    %cst_46 = arith.constant 1.000000e+00 : f32
    %171 = vector.broadcast %cst_46 : f32 to vector<8x24xf32>
    %172 = arith.addf %171, %170 : vector<8x24xf32>
    %173 = arith.divf %171, %172 : vector<8x24xf32>
    %174 = vector.extract_strided_slice %173 {offsets = [0, 0], sizes = [8, 12], strides = [1, 1]} : vector<8x24xf32> to vector<8x12xf32>
    %175 = vector.extract_strided_slice %173 {offsets = [0, 12], sizes = [8, 12], strides = [1, 1]} : vector<8x24xf32> to vector<8x12xf32>
    %176 = vector.extract_strided_slice %164 {offsets = [0, 24], sizes = [8, 12], strides = [1, 1]} : vector<8x36xf32> to vector<8x12xf32>
    %177 = arith.addf %176, %11 : vector<8x12xf32>
    %178 = vector.extract_strided_slice %141 {offsets = [0, 24], sizes = [8, 12], strides = [1, 1]} : vector<8x36xf32> to vector<8x12xf32>
    %179 = arith.addf %178, %14 : vector<8x12xf32>
    %180 = arith.mulf %174, %179 : vector<8x12xf32>
    %181 = arith.addf %177, %180 : vector<8x12xf32>
    %182 = math.tanh %181 : vector<8x12xf32>
    %cst_47 = arith.constant 1.000000e+00 : f32
    %183 = vector.broadcast %cst_47 : f32 to vector<8x12xf32>
    %184 = arith.subf %183, %175 : vector<8x12xf32>
    %185 = arith.mulf %184, %182 : vector<8x12xf32>
    %186 = arith.mulf %175, %132 : vector<8x12xf32>
    %187 = arith.addf %185, %186 : vector<8x12xf32>
    %c2 = arith.constant 2 : index
    %c0_48 = arith.constant 0 : index
    %c0_49 = arith.constant 0 : index
    %188 = vector.load %arg14[%c2, %c0_48, %c0_49] : memref<8x8x12xf32, #tpu.memory_space<vmem>>, vector<1x8x12xf32>
    %189 = vector.shape_cast %188 : vector<1x8x12xf32> to vector<8x12xf32>
    %190 = vector.shape_cast %187 : vector<8x12xf32> to vector<1x8x12xf32>
    tpu.vector_store %arg14[%c2, %c0_48, %c0_49], %190 {strides = array<i32>} : memref<8x8x12xf32, #tpu.memory_space<vmem>>, vector<1x8x12xf32>,
    %191 = vector.extract_strided_slice %23 {offsets = [3, 0, 0], sizes = [1, 8, 36], strides = [1, 1, 1]} : vector<8x8x36xf32> to vector<1x8x36xf32>
    %192 = vector.shape_cast %191 : vector<1x8x36xf32> to vector<8x36xf32>
    %193 = arith.truncf %162 : vector<8x12xf32> to vector<8x12xbf16>
    %cst_50 = arith.constant dense<0.000000e+00> : vector<8x36xf32>
    %194 = tpu.matmul %193, %0, %cst_50 {dimension_numbers = #tpu.dot_dimension_numbers<[1], [0], [0], [1], [0, 0, 1, 1], [], []>} : vector<8x12xbf16>, vector<12x36xbf16>, vector<8x36xf32> -> vector<8x36xf32>
    %195 = arith.truncf %187 : vector<8x12xf32> to vector<8x12xbf16>
    %cst_51 = arith.constant dense<0.000000e+00> : vector<8x36xf32>
    %196 = tpu.matmul %195, %2, %cst_51 {dimension_numbers = #tpu.dot_dimension_numbers<[1], [0], [0], [1], [0, 0, 1, 1], [], []>} : vector<8x12xbf16>, vector<12x36xbf16>, vector<8x36xf32> -> vector<8x36xf32>
    %197 = vector.extract_strided_slice %192 {offsets = [0, 0], sizes = [8, 24], strides = [1, 1]} : vector<8x36xf32> to vector<8x24xf32>
    %198 = vector.extract_strided_slice %194 {offsets = [0, 0], sizes = [8, 24], strides = [1, 1]} : vector<8x36xf32> to vector<8x24xf32>
    %199 = arith.addf %197, %198 : vector<8x24xf32>
    %200 = arith.negf %199 : vector<8x24xf32>
    %201 = math.exp %200 : vector<8x24xf32>
    %cst_52 = arith.constant 1.000000e+00 : f32
    %202 = vector.broadcast %cst_52 : f32 to vector<8x24xf32>
    %203 = arith.addf %202, %201 : vector<8x24xf32>
    %204 = arith.divf %202, %203 : vector<8x24xf32>
    %205 = vector.extract_strided_slice %204 {offsets = [0, 0], sizes = [8, 12], strides = [1, 1]} : vector<8x24xf32> to vector<8x12xf32>
    %206 = vector.extract_strided_slice %204 {offsets = [0, 12], sizes = [8, 12], strides = [1, 1]} : vector<8x24xf32> to vector<8x12xf32>
    %207 = vector.extract_strided_slice %192 {offsets = [0, 24], sizes = [8, 12], strides = [1, 1]} : vector<8x36xf32> to vector<8x12xf32>
    %208 = vector.extract_strided_slice %194 {offsets = [0, 24], sizes = [8, 12], strides = [1, 1]} : vector<8x36xf32> to vector<8x12xf32>
    %209 = arith.addf %208, %5 : vector<8x12xf32>
    %210 = arith.mulf %205, %209 : vector<8x12xf32>
    %211 = arith.addf %207, %210 : vector<8x12xf32>
    %212 = math.tanh %211 : vector<8x12xf32>
    %cst_53 = arith.constant 1.000000e+00 : f32
    %213 = vector.broadcast %cst_53 : f32 to vector<8x12xf32>
    %214 = arith.subf %213, %206 : vector<8x12xf32>
    %215 = arith.mulf %214, %212 : vector<8x12xf32>
    %216 = arith.mulf %206, %162 : vector<8x12xf32>
    %217 = arith.addf %215, %216 : vector<8x12xf32>
    %218 = arith.truncf %217 : vector<8x12xf32> to vector<8x12xbf16>
    %cst_54 = arith.constant dense<0.000000e+00> : vector<8x36xf32>
    %219 = tpu.matmul %218, %1, %cst_54 {dimension_numbers = #tpu.dot_dimension_numbers<[1], [0], [0], [1], [0, 0, 1, 1], [], []>} : vector<8x12xbf16>, vector<12x36xbf16>, vector<8x36xf32> -> vector<8x36xf32>
    %220 = vector.extract_strided_slice %219 {offsets = [0, 0], sizes = [8, 24], strides = [1, 1]} : vector<8x36xf32> to vector<8x24xf32>
    %221 = vector.extract_strided_slice %196 {offsets = [0, 0], sizes = [8, 24], strides = [1, 1]} : vector<8x36xf32> to vector<8x24xf32>
    %222 = arith.addf %220, %221 : vector<8x24xf32>
    %223 = arith.addf %222, %8 : vector<8x24xf32>
    %224 = arith.negf %223 : vector<8x24xf32>
    %225 = math.exp %224 : vector<8x24xf32>
    %cst_55 = arith.constant 1.000000e+00 : f32
    %226 = vector.broadcast %cst_55 : f32 to vector<8x24xf32>
    %227 = arith.addf %226, %225 : vector<8x24xf32>
    %228 = arith.divf %226, %227 : vector<8x24xf32>
    %229 = vector.extract_strided_slice %228 {offsets = [0, 0], sizes = [8, 12], strides = [1, 1]} : vector<8x24xf32> to vector<8x12xf32>
    %230 = vector.extract_strided_slice %228 {offsets = [0, 12], sizes = [8, 12], strides = [1, 1]} : vector<8x24xf32> to vector<8x12xf32>
    %231 = vector.extract_strided_slice %219 {offsets = [0, 24], sizes = [8, 12], strides = [1, 1]} : vector<8x36xf32> to vector<8x12xf32>
    %232 = arith.addf %231, %11 : vector<8x12xf32>
    %233 = vector.extract_strided_slice %196 {offsets = [0, 24], sizes = [8, 12], strides = [1, 1]} : vector<8x36xf32> to vector<8x12xf32>
    %234 = arith.addf %233, %14 : vector<8x12xf32>
    %235 = arith.mulf %229, %234 : vector<8x12xf32>
    %236 = arith.addf %232, %235 : vector<8x12xf32>
    %237 = math.tanh %236 : vector<8x12xf32>
    %cst_56 = arith.constant 1.000000e+00 : f32
    %238 = vector.broadcast %cst_56 : f32 to vector<8x12xf32>
    %239 = arith.subf %238, %230 : vector<8x12xf32>
    %240 = arith.mulf %239, %237 : vector<8x12xf32>
    %241 = arith.mulf %230, %187 : vector<8x12xf32>
    %242 = arith.addf %240, %241 : vector<8x12xf32>
    %c3 = arith.constant 3 : index
    %c0_57 = arith.constant 0 : index
    %c0_58 = arith.constant 0 : index
    %243 = vector.load %arg14[%c3, %c0_57, %c0_58] : memref<8x8x12xf32, #tpu.memory_space<vmem>>, vector<1x8x12xf32>
    %244 = vector.shape_cast %243 : vector<1x8x12xf32> to vector<8x12xf32>
    %245 = vector.shape_cast %242 : vector<8x12xf32> to vector<1x8x12xf32>
    tpu.vector_store %arg14[%c3, %c0_57, %c0_58], %245 {strides = array<i32>} : memref<8x8x12xf32, #tpu.memory_space<vmem>>, vector<1x8x12xf32>,
    %246 = vector.extract_strided_slice %23 {offsets = [4, 0, 0], sizes = [1, 8, 36], strides = [1, 1, 1]} : vector<8x8x36xf32> to vector<1x8x36xf32>
    %247 = vector.shape_cast %246 : vector<1x8x36xf32> to vector<8x36xf32>
    %248 = arith.truncf %217 : vector<8x12xf32> to vector<8x12xbf16>
    %cst_59 = arith.constant dense<0.000000e+00> : vector<8x36xf32>
    %249 = tpu.matmul %248, %0, %cst_59 {dimension_numbers = #tpu.dot_dimension_numbers<[1], [0], [0], [1], [0, 0, 1, 1], [], []>} : vector<8x12xbf16>, vector<12x36xbf16>, vector<8x36xf32> -> vector<8x36xf32>
    %250 = arith.truncf %242 : vector<8x12xf32> to vector<8x12xbf16>
    %cst_60 = arith.constant dense<0.000000e+00> : vector<8x36xf32>
    %251 = tpu.matmul %250, %2, %cst_60 {dimension_numbers = #tpu.dot_dimension_numbers<[1], [0], [0], [1], [0, 0, 1, 1], [], []>} : vector<8x12xbf16>, vector<12x36xbf16>, vector<8x36xf32> -> vector<8x36xf32>
    %252 = vector.extract_strided_slice %247 {offsets = [0, 0], sizes = [8, 24], strides = [1, 1]} : vector<8x36xf32> to vector<8x24xf32>
    %253 = vector.extract_strided_slice %249 {offsets = [0, 0], sizes = [8, 24], strides = [1, 1]} : vector<8x36xf32> to vector<8x24xf32>
    %254 = arith.addf %252, %253 : vector<8x24xf32>
    %255 = arith.negf %254 : vector<8x24xf32>
    %256 = math.exp %255 : vector<8x24xf32>
    %cst_61 = arith.constant 1.000000e+00 : f32
    %257 = vector.broadcast %cst_61 : f32 to vector<8x24xf32>
    %258 = arith.addf %257, %256 : vector<8x24xf32>
    %259 = arith.divf %257, %258 : vector<8x24xf32>
    %260 = vector.extract_strided_slice %259 {offsets = [0, 0], sizes = [8, 12], strides = [1, 1]} : vector<8x24xf32> to vector<8x12xf32>
    %261 = vector.extract_strided_slice %259 {offsets = [0, 12], sizes = [8, 12], strides = [1, 1]} : vector<8x24xf32> to vector<8x12xf32>
    %262 = vector.extract_strided_slice %247 {offsets = [0, 24], sizes = [8, 12], strides = [1, 1]} : vector<8x36xf32> to vector<8x12xf32>
    %263 = vector.extract_strided_slice %249 {offsets = [0, 24], sizes = [8, 12], strides = [1, 1]} : vector<8x36xf32> to vector<8x12xf32>
    %264 = arith.addf %263, %5 : vector<8x12xf32>
    %265 = arith.mulf %260, %264 : vector<8x12xf32>
    %266 = arith.addf %262, %265 : vector<8x12xf32>
    %267 = math.tanh %266 : vector<8x12xf32>
    %cst_62 = arith.constant 1.000000e+00 : f32
    %268 = vector.broadcast %cst_62 : f32 to vector<8x12xf32>
    %269 = arith.subf %268, %261 : vector<8x12xf32>
    %270 = arith.mulf %269, %267 : vector<8x12xf32>
    %271 = arith.mulf %261, %217 : vector<8x12xf32>
    %272 = arith.addf %270, %271 : vector<8x12xf32>
    %273 = arith.truncf %272 : vector<8x12xf32> to vector<8x12xbf16>
    %cst_63 = arith.constant dense<0.000000e+00> : vector<8x36xf32>
    %274 = tpu.matmul %273, %1, %cst_63 {dimension_numbers = #tpu.dot_dimension_numbers<[1], [0], [0], [1], [0, 0, 1, 1], [], []>} : vector<8x12xbf16>, vector<12x36xbf16>, vector<8x36xf32> -> vector<8x36xf32>
    %275 = vector.extract_strided_slice %274 {offsets = [0, 0], sizes = [8, 24], strides = [1, 1]} : vector<8x36xf32> to vector<8x24xf32>
    %276 = vector.extract_strided_slice %251 {offsets = [0, 0], sizes = [8, 24], strides = [1, 1]} : vector<8x36xf32> to vector<8x24xf32>
    %277 = arith.addf %275, %276 : vector<8x24xf32>
    %278 = arith.addf %277, %8 : vector<8x24xf32>
    %279 = arith.negf %278 : vector<8x24xf32>
    %280 = math.exp %279 : vector<8x24xf32>
    %cst_64 = arith.constant 1.000000e+00 : f32
    %281 = vector.broadcast %cst_64 : f32 to vector<8x24xf32>
    %282 = arith.addf %281, %280 : vector<8x24xf32>
    %283 = arith.divf %281, %282 : vector<8x24xf32>
    %284 = vector.extract_strided_slice %283 {offsets = [0, 0], sizes = [8, 12], strides = [1, 1]} : vector<8x24xf32> to vector<8x12xf32>
    %285 = vector.extract_strided_slice %283 {offsets = [0, 12], sizes = [8, 12], strides = [1, 1]} : vector<8x24xf32> to vector<8x12xf32>
    %286 = vector.extract_strided_slice %274 {offsets = [0, 24], sizes = [8, 12], strides = [1, 1]} : vector<8x36xf32> to vector<8x12xf32>
    %287 = arith.addf %286, %11 : vector<8x12xf32>
    %288 = vector.extract_strided_slice %251 {offsets = [0, 24], sizes = [8, 12], strides = [1, 1]} : vector<8x36xf32> to vector<8x12xf32>
    %289 = arith.addf %288, %14 : vector<8x12xf32>
    %290 = arith.mulf %284, %289 : vector<8x12xf32>
    %291 = arith.addf %287, %290 : vector<8x12xf32>
    %292 = math.tanh %291 : vector<8x12xf32>
    %cst_65 = arith.constant 1.000000e+00 : f32
    %293 = vector.broadcast %cst_65 : f32 to vector<8x12xf32>
    %294 = arith.subf %293, %285 : vector<8x12xf32>
    %295 = arith.mulf %294, %292 : vector<8x12xf32>
    %296 = arith.mulf %285, %242 : vector<8x12xf32>
    %297 = arith.addf %295, %296 : vector<8x12xf32>
    %c4 = arith.constant 4 : index
    %c0_66 = arith.constant 0 : index
    %c0_67 = arith.constant 0 : index
    %298 = vector.load %arg14[%c4, %c0_66, %c0_67] : memref<8x8x12xf32, #tpu.memory_space<vmem>>, vector<1x8x12xf32>
    %299 = vector.shape_cast %298 : vector<1x8x12xf32> to vector<8x12xf32>
    %300 = vector.shape_cast %297 : vector<8x12xf32> to vector<1x8x12xf32>
    tpu.vector_store %arg14[%c4, %c0_66, %c0_67], %300 {strides = array<i32>} : memref<8x8x12xf32, #tpu.memory_space<vmem>>, vector<1x8x12xf32>,
    %301 = vector.extract_strided_slice %23 {offsets = [5, 0, 0], sizes = [1, 8, 36], strides = [1, 1, 1]} : vector<8x8x36xf32> to vector<1x8x36xf32>
    %302 = vector.shape_cast %301 : vector<1x8x36xf32> to vector<8x36xf32>
    %303 = arith.truncf %272 : vector<8x12xf32> to vector<8x12xbf16>
    %cst_68 = arith.constant dense<0.000000e+00> : vector<8x36xf32>
    %304 = tpu.matmul %303, %0, %cst_68 {dimension_numbers = #tpu.dot_dimension_numbers<[1], [0], [0], [1], [0, 0, 1, 1], [], []>} : vector<8x12xbf16>, vector<12x36xbf16>, vector<8x36xf32> -> vector<8x36xf32>
    %305 = arith.truncf %297 : vector<8x12xf32> to vector<8x12xbf16>
    %cst_69 = arith.constant dense<0.000000e+00> : vector<8x36xf32>
    %306 = tpu.matmul %305, %2, %cst_69 {dimension_numbers = #tpu.dot_dimension_numbers<[1], [0], [0], [1], [0, 0, 1, 1], [], []>} : vector<8x12xbf16>, vector<12x36xbf16>, vector<8x36xf32> -> vector<8x36xf32>
    %307 = vector.extract_strided_slice %302 {offsets = [0, 0], sizes = [8, 24], strides = [1, 1]} : vector<8x36xf32> to vector<8x24xf32>
    %308 = vector.extract_strided_slice %304 {offsets = [0, 0], sizes = [8, 24], strides = [1, 1]} : vector<8x36xf32> to vector<8x24xf32>
    %309 = arith.addf %307, %308 : vector<8x24xf32>
    %310 = arith.negf %309 : vector<8x24xf32>
    %311 = math.exp %310 : vector<8x24xf32>
    %cst_70 = arith.constant 1.000000e+00 : f32
    %312 = vector.broadcast %cst_70 : f32 to vector<8x24xf32>
    %313 = arith.addf %312, %311 : vector<8x24xf32>
    %314 = arith.divf %312, %313 : vector<8x24xf32>
    %315 = vector.extract_strided_slice %314 {offsets = [0, 0], sizes = [8, 12], strides = [1, 1]} : vector<8x24xf32> to vector<8x12xf32>
    %316 = vector.extract_strided_slice %314 {offsets = [0, 12], sizes = [8, 12], strides = [1, 1]} : vector<8x24xf32> to vector<8x12xf32>
    %317 = vector.extract_strided_slice %302 {offsets = [0, 24], sizes = [8, 12], strides = [1, 1]} : vector<8x36xf32> to vector<8x12xf32>
    %318 = vector.extract_strided_slice %304 {offsets = [0, 24], sizes = [8, 12], strides = [1, 1]} : vector<8x36xf32> to vector<8x12xf32>
    %319 = arith.addf %318, %5 : vector<8x12xf32>
    %320 = arith.mulf %315, %319 : vector<8x12xf32>
    %321 = arith.addf %317, %320 : vector<8x12xf32>
    %322 = math.tanh %321 : vector<8x12xf32>
    %cst_71 = arith.constant 1.000000e+00 : f32
    %323 = vector.broadcast %cst_71 : f32 to vector<8x12xf32>
    %324 = arith.subf %323, %316 : vector<8x12xf32>
    %325 = arith.mulf %324, %322 : vector<8x12xf32>
    %326 = arith.mulf %316, %272 : vector<8x12xf32>
    %327 = arith.addf %325, %326 : vector<8x12xf32>
    %328 = arith.truncf %327 : vector<8x12xf32> to vector<8x12xbf16>
    %cst_72 = arith.constant dense<0.000000e+00> : vector<8x36xf32>
    %329 = tpu.matmul %328, %1, %cst_72 {dimension_numbers = #tpu.dot_dimension_numbers<[1], [0], [0], [1], [0, 0, 1, 1], [], []>} : vector<8x12xbf16>, vector<12x36xbf16>, vector<8x36xf32> -> vector<8x36xf32>
    %330 = vector.extract_strided_slice %329 {offsets = [0, 0], sizes = [8, 24], strides = [1, 1]} : vector<8x36xf32> to vector<8x24xf32>
    %331 = vector.extract_strided_slice %306 {offsets = [0, 0], sizes = [8, 24], strides = [1, 1]} : vector<8x36xf32> to vector<8x24xf32>
    %332 = arith.addf %330, %331 : vector<8x24xf32>
    %333 = arith.addf %332, %8 : vector<8x24xf32>
    %334 = arith.negf %333 : vector<8x24xf32>
    %335 = math.exp %334 : vector<8x24xf32>
    %cst_73 = arith.constant 1.000000e+00 : f32
    %336 = vector.broadcast %cst_73 : f32 to vector<8x24xf32>
    %337 = arith.addf %336, %335 : vector<8x24xf32>
    %338 = arith.divf %336, %337 : vector<8x24xf32>
    %339 = vector.extract_strided_slice %338 {offsets = [0, 0], sizes = [8, 12], strides = [1, 1]} : vector<8x24xf32> to vector<8x12xf32>
    %340 = vector.extract_strided_slice %338 {offsets = [0, 12], sizes = [8, 12], strides = [1, 1]} : vector<8x24xf32> to vector<8x12xf32>
    %341 = vector.extract_strided_slice %329 {offsets = [0, 24], sizes = [8, 12], strides = [1, 1]} : vector<8x36xf32> to vector<8x12xf32>
    %342 = arith.addf %341, %11 : vector<8x12xf32>
    %343 = vector.extract_strided_slice %306 {offsets = [0, 24], sizes = [8, 12], strides = [1, 1]} : vector<8x36xf32> to vector<8x12xf32>
    %344 = arith.addf %343, %14 : vector<8x12xf32>
    %345 = arith.mulf %339, %344 : vector<8x12xf32>
    %346 = arith.addf %342, %345 : vector<8x12xf32>
    %347 = math.tanh %346 : vector<8x12xf32>
    %cst_74 = arith.constant 1.000000e+00 : f32
    %348 = vector.broadcast %cst_74 : f32 to vector<8x12xf32>
    %349 = arith.subf %348, %340 : vector<8x12xf32>
    %350 = arith.mulf %349, %347 : vector<8x12xf32>
    %351 = arith.mulf %340, %297 : vector<8x12xf32>
    %352 = arith.addf %350, %351 : vector<8x12xf32>
    %c5 = arith.constant 5 : index
    %c0_75 = arith.constant 0 : index
    %c0_76 = arith.constant 0 : index
    %353 = vector.load %arg14[%c5, %c0_75, %c0_76] : memref<8x8x12xf32, #tpu.memory_space<vmem>>, vector<1x8x12xf32>
    %354 = vector.shape_cast %353 : vector<1x8x12xf32> to vector<8x12xf32>
    %355 = vector.shape_cast %352 : vector<8x12xf32> to vector<1x8x12xf32>
    tpu.vector_store %arg14[%c5, %c0_75, %c0_76], %355 {strides = array<i32>} : memref<8x8x12xf32, #tpu.memory_space<vmem>>, vector<1x8x12xf32>,
    %356 = vector.extract_strided_slice %23 {offsets = [6, 0, 0], sizes = [1, 8, 36], strides = [1, 1, 1]} : vector<8x8x36xf32> to vector<1x8x36xf32>
    %357 = vector.shape_cast %356 : vector<1x8x36xf32> to vector<8x36xf32>
    %358 = arith.truncf %327 : vector<8x12xf32> to vector<8x12xbf16>
    %cst_77 = arith.constant dense<0.000000e+00> : vector<8x36xf32>
    %359 = tpu.matmul %358, %0, %cst_77 {dimension_numbers = #tpu.dot_dimension_numbers<[1], [0], [0], [1], [0, 0, 1, 1], [], []>} : vector<8x12xbf16>, vector<12x36xbf16>, vector<8x36xf32> -> vector<8x36xf32>
    %360 = arith.truncf %352 : vector<8x12xf32> to vector<8x12xbf16>
    %cst_78 = arith.constant dense<0.000000e+00> : vector<8x36xf32>
    %361 = tpu.matmul %360, %2, %cst_78 {dimension_numbers = #tpu.dot_dimension_numbers<[1], [0], [0], [1], [0, 0, 1, 1], [], []>} : vector<8x12xbf16>, vector<12x36xbf16>, vector<8x36xf32> -> vector<8x36xf32>
    %362 = vector.extract_strided_slice %357 {offsets = [0, 0], sizes = [8, 24], strides = [1, 1]} : vector<8x36xf32> to vector<8x24xf32>
    %363 = vector.extract_strided_slice %359 {offsets = [0, 0], sizes = [8, 24], strides = [1, 1]} : vector<8x36xf32> to vector<8x24xf32>
    %364 = arith.addf %362, %363 : vector<8x24xf32>
    %365 = arith.negf %364 : vector<8x24xf32>
    %366 = math.exp %365 : vector<8x24xf32>
    %cst_79 = arith.constant 1.000000e+00 : f32
    %367 = vector.broadcast %cst_79 : f32 to vector<8x24xf32>
    %368 = arith.addf %367, %366 : vector<8x24xf32>
    %369 = arith.divf %367, %368 : vector<8x24xf32>
    %370 = vector.extract_strided_slice %369 {offsets = [0, 0], sizes = [8, 12], strides = [1, 1]} : vector<8x24xf32> to vector<8x12xf32>
    %371 = vector.extract_strided_slice %369 {offsets = [0, 12], sizes = [8, 12], strides = [1, 1]} : vector<8x24xf32> to vector<8x12xf32>
    %372 = vector.extract_strided_slice %357 {offsets = [0, 24], sizes = [8, 12], strides = [1, 1]} : vector<8x36xf32> to vector<8x12xf32>
    %373 = vector.extract_strided_slice %359 {offsets = [0, 24], sizes = [8, 12], strides = [1, 1]} : vector<8x36xf32> to vector<8x12xf32>
    %374 = arith.addf %373, %5 : vector<8x12xf32>
    %375 = arith.mulf %370, %374 : vector<8x12xf32>
    %376 = arith.addf %372, %375 : vector<8x12xf32>
    %377 = math.tanh %376 : vector<8x12xf32>
    %cst_80 = arith.constant 1.000000e+00 : f32
    %378 = vector.broadcast %cst_80 : f32 to vector<8x12xf32>
    %379 = arith.subf %378, %371 : vector<8x12xf32>
    %380 = arith.mulf %379, %377 : vector<8x12xf32>
    %381 = arith.mulf %371, %327 : vector<8x12xf32>
    %382 = arith.addf %380, %381 : vector<8x12xf32>
    %383 = arith.truncf %382 : vector<8x12xf32> to vector<8x12xbf16>
    %cst_81 = arith.constant dense<0.000000e+00> : vector<8x36xf32>
    %384 = tpu.matmul %383, %1, %cst_81 {dimension_numbers = #tpu.dot_dimension_numbers<[1], [0], [0], [1], [0, 0, 1, 1], [], []>} : vector<8x12xbf16>, vector<12x36xbf16>, vector<8x36xf32> -> vector<8x36xf32>
    %385 = vector.extract_strided_slice %384 {offsets = [0, 0], sizes = [8, 24], strides = [1, 1]} : vector<8x36xf32> to vector<8x24xf32>
    %386 = vector.extract_strided_slice %361 {offsets = [0, 0], sizes = [8, 24], strides = [1, 1]} : vector<8x36xf32> to vector<8x24xf32>
    %387 = arith.addf %385, %386 : vector<8x24xf32>
    %388 = arith.addf %387, %8 : vector<8x24xf32>
    %389 = arith.negf %388 : vector<8x24xf32>
    %390 = math.exp %389 : vector<8x24xf32>
    %cst_82 = arith.constant 1.000000e+00 : f32
    %391 = vector.broadcast %cst_82 : f32 to vector<8x24xf32>
    %392 = arith.addf %391, %390 : vector<8x24xf32>
    %393 = arith.divf %391, %392 : vector<8x24xf32>
    %394 = vector.extract_strided_slice %393 {offsets = [0, 0], sizes = [8, 12], strides = [1, 1]} : vector<8x24xf32> to vector<8x12xf32>
    %395 = vector.extract_strided_slice %393 {offsets = [0, 12], sizes = [8, 12], strides = [1, 1]} : vector<8x24xf32> to vector<8x12xf32>
    %396 = vector.extract_strided_slice %384 {offsets = [0, 24], sizes = [8, 12], strides = [1, 1]} : vector<8x36xf32> to vector<8x12xf32>
    %397 = arith.addf %396, %11 : vector<8x12xf32>
    %398 = vector.extract_strided_slice %361 {offsets = [0, 24], sizes = [8, 12], strides = [1, 1]} : vector<8x36xf32> to vector<8x12xf32>
    %399 = arith.addf %398, %14 : vector<8x12xf32>
    %400 = arith.mulf %394, %399 : vector<8x12xf32>
    %401 = arith.addf %397, %400 : vector<8x12xf32>
    %402 = math.tanh %401 : vector<8x12xf32>
    %cst_83 = arith.constant 1.000000e+00 : f32
    %403 = vector.broadcast %cst_83 : f32 to vector<8x12xf32>
    %404 = arith.subf %403, %395 : vector<8x12xf32>
    %405 = arith.mulf %404, %402 : vector<8x12xf32>
    %406 = arith.mulf %395, %352 : vector<8x12xf32>
    %407 = arith.addf %405, %406 : vector<8x12xf32>
    %c6 = arith.constant 6 : index
    %c0_84 = arith.constant 0 : index
    %c0_85 = arith.constant 0 : index
    %408 = vector.load %arg14[%c6, %c0_84, %c0_85] : memref<8x8x12xf32, #tpu.memory_space<vmem>>, vector<1x8x12xf32>
    %409 = vector.shape_cast %408 : vector<1x8x12xf32> to vector<8x12xf32>
    %410 = vector.shape_cast %407 : vector<8x12xf32> to vector<1x8x12xf32>
    tpu.vector_store %arg14[%c6, %c0_84, %c0_85], %410 {strides = array<i32>} : memref<8x8x12xf32, #tpu.memory_space<vmem>>, vector<1x8x12xf32>,
    %411 = vector.extract_strided_slice %23 {offsets = [7, 0, 0], sizes = [1, 8, 36], strides = [1, 1, 1]} : vector<8x8x36xf32> to vector<1x8x36xf32>
    %412 = vector.shape_cast %411 : vector<1x8x36xf32> to vector<8x36xf32>
    %413 = arith.truncf %382 : vector<8x12xf32> to vector<8x12xbf16>
    %cst_86 = arith.constant dense<0.000000e+00> : vector<8x36xf32>
    %414 = tpu.matmul %413, %0, %cst_86 {dimension_numbers = #tpu.dot_dimension_numbers<[1], [0], [0], [1], [0, 0, 1, 1], [], []>} : vector<8x12xbf16>, vector<12x36xbf16>, vector<8x36xf32> -> vector<8x36xf32>
    %415 = arith.truncf %407 : vector<8x12xf32> to vector<8x12xbf16>
    %cst_87 = arith.constant dense<0.000000e+00> : vector<8x36xf32>
    %416 = tpu.matmul %415, %2, %cst_87 {dimension_numbers = #tpu.dot_dimension_numbers<[1], [0], [0], [1], [0, 0, 1, 1], [], []>} : vector<8x12xbf16>, vector<12x36xbf16>, vector<8x36xf32> -> vector<8x36xf32>
    %417 = vector.extract_strided_slice %412 {offsets = [0, 0], sizes = [8, 24], strides = [1, 1]} : vector<8x36xf32> to vector<8x24xf32>
    %418 = vector.extract_strided_slice %414 {offsets = [0, 0], sizes = [8, 24], strides = [1, 1]} : vector<8x36xf32> to vector<8x24xf32>
    %419 = arith.addf %417, %418 : vector<8x24xf32>
    %420 = arith.negf %419 : vector<8x24xf32>
    %421 = math.exp %420 : vector<8x24xf32>
    %cst_88 = arith.constant 1.000000e+00 : f32
    %422 = vector.broadcast %cst_88 : f32 to vector<8x24xf32>
    %423 = arith.addf %422, %421 : vector<8x24xf32>
    %424 = arith.divf %422, %423 : vector<8x24xf32>
    %425 = vector.extract_strided_slice %424 {offsets = [0, 0], sizes = [8, 12], strides = [1, 1]} : vector<8x24xf32> to vector<8x12xf32>
    %426 = vector.extract_strided_slice %424 {offsets = [0, 12], sizes = [8, 12], strides = [1, 1]} : vector<8x24xf32> to vector<8x12xf32>
    %427 = vector.extract_strided_slice %412 {offsets = [0, 24], sizes = [8, 12], strides = [1, 1]} : vector<8x36xf32> to vector<8x12xf32>
    %428 = vector.extract_strided_slice %414 {offsets = [0, 24], sizes = [8, 12], strides = [1, 1]} : vector<8x36xf32> to vector<8x12xf32>
    %429 = arith.addf %428, %5 : vector<8x12xf32>
    %430 = arith.mulf %425, %429 : vector<8x12xf32>
    %431 = arith.addf %427, %430 : vector<8x12xf32>
    %432 = math.tanh %431 : vector<8x12xf32>
    %cst_89 = arith.constant 1.000000e+00 : f32
    %433 = vector.broadcast %cst_89 : f32 to vector<8x12xf32>
    %434 = arith.subf %433, %426 : vector<8x12xf32>
    %435 = arith.mulf %434, %432 : vector<8x12xf32>
    %436 = arith.mulf %426, %382 : vector<8x12xf32>
    %437 = arith.addf %435, %436 : vector<8x12xf32>
    %438 = arith.truncf %437 : vector<8x12xf32> to vector<8x12xbf16>
    %cst_90 = arith.constant dense<0.000000e+00> : vector<8x36xf32>
    %439 = tpu.matmul %438, %1, %cst_90 {dimension_numbers = #tpu.dot_dimension_numbers<[1], [0], [0], [1], [0, 0, 1, 1], [], []>} : vector<8x12xbf16>, vector<12x36xbf16>, vector<8x36xf32> -> vector<8x36xf32>
    %440 = vector.extract_strided_slice %439 {offsets = [0, 0], sizes = [8, 24], strides = [1, 1]} : vector<8x36xf32> to vector<8x24xf32>
    %441 = vector.extract_strided_slice %416 {offsets = [0, 0], sizes = [8, 24], strides = [1, 1]} : vector<8x36xf32> to vector<8x24xf32>
    %442 = arith.addf %440, %441 : vector<8x24xf32>
    %443 = arith.addf %442, %8 : vector<8x24xf32>
    %444 = arith.negf %443 : vector<8x24xf32>
    %445 = math.exp %444 : vector<8x24xf32>
    %cst_91 = arith.constant 1.000000e+00 : f32
    %446 = vector.broadcast %cst_91 : f32 to vector<8x24xf32>
    %447 = arith.addf %446, %445 : vector<8x24xf32>
    %448 = arith.divf %446, %447 : vector<8x24xf32>
    %449 = vector.extract_strided_slice %448 {offsets = [0, 0], sizes = [8, 12], strides = [1, 1]} : vector<8x24xf32> to vector<8x12xf32>
    %450 = vector.extract_strided_slice %448 {offsets = [0, 12], sizes = [8, 12], strides = [1, 1]} : vector<8x24xf32> to vector<8x12xf32>
    %451 = vector.extract_strided_slice %439 {offsets = [0, 24], sizes = [8, 12], strides = [1, 1]} : vector<8x36xf32> to vector<8x12xf32>
    %452 = arith.addf %451, %11 : vector<8x12xf32>
    %453 = vector.extract_strided_slice %416 {offsets = [0, 24], sizes = [8, 12], strides = [1, 1]} : vector<8x36xf32> to vector<8x12xf32>
    %454 = arith.addf %453, %14 : vector<8x12xf32>
    %455 = arith.mulf %449, %454 : vector<8x12xf32>
    %456 = arith.addf %452, %455 : vector<8x12xf32>
    %457 = math.tanh %456 : vector<8x12xf32>
    %cst_92 = arith.constant 1.000000e+00 : f32
    %458 = vector.broadcast %cst_92 : f32 to vector<8x12xf32>
    %459 = arith.subf %458, %450 : vector<8x12xf32>
    %460 = arith.mulf %459, %457 : vector<8x12xf32>
    %461 = arith.mulf %450, %407 : vector<8x12xf32>
    %462 = arith.addf %460, %461 : vector<8x12xf32>
    %c7 = arith.constant 7 : index
    %c0_93 = arith.constant 0 : index
    %c0_94 = arith.constant 0 : index
    %463 = vector.load %arg14[%c7, %c0_93, %c0_94] : memref<8x8x12xf32, #tpu.memory_space<vmem>>, vector<1x8x12xf32>
    %464 = vector.shape_cast %463 : vector<1x8x12xf32> to vector<8x12xf32>
    %465 = vector.shape_cast %462 : vector<8x12xf32> to vector<1x8x12xf32>
    tpu.vector_store %arg14[%c7, %c0_93, %c0_94], %465 {strides = array<i32>} : memref<8x8x12xf32, #tpu.memory_space<vmem>>, vector<1x8x12xf32>,
    %c0_95 = arith.constant 0 : index
    %c0_96 = arith.constant 0 : index
    %c0_97 = arith.constant 0 : index
    %466 = vector.load %arg14[%c0_95, %c0_96, %c0_97] : memref<8x8x12xf32, #tpu.memory_space<vmem>>, vector<8x8x12xf32>
    %c0_98 = arith.constant 0 : index
    %c0_99 = arith.constant 0 : index
    %467 = vector.load %arg11[%c0_98, %c0_99] : memref<1x12xf32, #tpu.memory_space<vmem>>, vector<1x12xf32>
    %468 = vector.shape_cast %467 : vector<1x12xf32> to vector<1x1x12xf32>
    %469 = vector.broadcast %468 : vector<1x1x12xf32> to vector<8x8x12xf32>
    %470 = arith.mulf %466, %469 : vector<8x8x12xf32>
    %cst_100 = arith.constant dense<0.000000e+00> : vector<8x8xf32>
    %471 = vector.multi_reduction <add>, %470, %cst_100 [2] : vector<8x8x12xf32> to vector<8x8xf32>
    %472 = vector.shape_cast %471 : vector<8x8xf32> to vector<8x8x1xf32>
    %c0_101 = arith.constant 0 : index
    %c0_102 = arith.constant 0 : index
    %473 = vector.load %arg12[%c0_101, %c0_102] : memref<1x1xf32, #tpu.memory_space<vmem>>, vector<1x1xf32>
    %474 = vector.shape_cast %473 : vector<1x1xf32> to vector<1x1x1xf32>
    %475 = vector.broadcast %474 : vector<1x1x1xf32> to vector<8x8x1xf32>
    %476 = arith.addf %472, %475 : vector<8x8x1xf32>
    %c0_103 = arith.constant 0 : index
    %c0_104 = arith.constant 0 : index
    %c0_105 = arith.constant 0 : index
    %477 = vector.load %arg13[%c0_103, %c0_104, %c0_105] : memref<8x8x1xf32, #tpu.memory_space<vmem>>, vector<8x8x1xf32>
    tpu.vector_store %arg13[%c0_103, %c0_104, %c0_105], %476 {strides = array<i32>} : memref<8x8x1xf32, #tpu.memory_space<vmem>>, vector<8x8x1xf32>,
    return
  }
  func.func @transform_0(%arg0: i32) -> (i32, i32, i32) {
    %c0_i32 = arith.constant 0 : i32
    %c0_i32_0 = arith.constant 0 : i32
    %c0_i32_1 = arith.constant 0 : i32
    return %c0_i32, %arg0, %c0_i32_0 : i32, i32, i32
  }
  func.func @transform_1(%arg0: i32) -> (i32, i32) {
    %c0_i32 = arith.constant 0 : i32
    %c0_i32_0 = arith.constant 0 : i32
    %c0_i32_1 = arith.constant 0 : i32
    return %c0_i32, %c0_i32_0 : i32, i32
  }
  func.func @transform_2(%arg0: i32) -> (i32, i32) {
    %c0_i32 = arith.constant 0 : i32
    %c0_i32_0 = arith.constant 0 : i32
    %c0_i32_1 = arith.constant 0 : i32
    return %c0_i32, %c0_i32_0 : i32, i32
  }
  func.func @transform_3(%arg0: i32) -> (i32, i32) {
    %c0_i32 = arith.constant 0 : i32
    %c0_i32_0 = arith.constant 0 : i32
    %c0_i32_1 = arith.constant 0 : i32
    return %c0_i32, %c0_i32_0 : i32, i32
  }
  func.func @transform_4(%arg0: i32) -> (i32, i32) {
    %c0_i32 = arith.constant 0 : i32
    %c0_i32_0 = arith.constant 0 : i32
    %c0_i32_1 = arith.constant 0 : i32
    return %c0_i32, %c0_i32_0 : i32, i32
  }
  func.func @transform_5(%arg0: i32) -> (i32, i32) {
    %c0_i32 = arith.constant 0 : i32
    %c0_i32_0 = arith.constant 0 : i32
    %c0_i32_1 = arith.constant 0 : i32
    return %c0_i32, %c0_i32_0 : i32, i32
  }
  func.func @transform_6(%arg0: i32) -> (i32, i32) {
    %c0_i32 = arith.constant 0 : i32
    %c0_i32_0 = arith.constant 0 : i32
    %c0_i32_1 = arith.constant 0 : i32
    return %c0_i32, %c0_i32_0 : i32, i32
  }
  func.func @transform_7(%arg0: i32) -> (i32, i32) {
    %c0_i32 = arith.constant 0 : i32
    %c0_i32_0 = arith.constant 0 : i32
    %c0_i32_1 = arith.constant 0 : i32
    return %c0_i32, %c0_i32_0 : i32, i32
  }
  func.func @transform_8(%arg0: i32) -> (i32, i32) {
    %c0_i32 = arith.constant 0 : i32
    %c0_i32_0 = arith.constant 0 : i32
    %c0_i32_1 = arith.constant 0 : i32
    return %c0_i32, %c0_i32_0 : i32, i32
  }
  func.func @transform_9(%arg0: i32) -> (i32, i32) {
    %c0_i32 = arith.constant 0 : i32
    %c0_i32_0 = arith.constant 0 : i32
    %c0_i32_1 = arith.constant 0 : i32
    return %c0_i32, %c0_i32_0 : i32, i32
  }
  func.func @transform_10(%arg0: i32) -> (i32, i32) {
    %c0_i32 = arith.constant 0 : i32
    %c0_i32_0 = arith.constant 0 : i32
    %c0_i32_1 = arith.constant 0 : i32
    return %c0_i32, %c0_i32_0 : i32, i32
  }
  func.func @transform_11(%arg0: i32) -> (i32, i32) {
    %c0_i32 = arith.constant 0 : i32
    %c0_i32_0 = arith.constant 0 : i32
    %c0_i32_1 = arith.constant 0 : i32
    return %c0_i32, %c0_i32_0 : i32, i32
  }
  func.func @transform_12(%arg0: i32) -> (i32, i32, i32) {
    %c0_i32 = arith.constant 0 : i32
    %c0_i32_0 = arith.constant 0 : i32
    %c0_i32_1 = arith.constant 0 : i32
    return %c0_i32, %arg0, %c0_i32_0 : i32, i32, i32
  }
}

</mosaic_0001>

<bundles_post_ra>
// kernel: tpu_custom_call.1
= control target key start
LH: loop header
LB: loop body
LE: loop exit
PB: predicated region body
PF: predicated region fallthrough
CT: control target
= control target key end

     0   :  { %s2201_s0 = inlined_call_operand.hbm [shape: f32[8,8,18], index: 0, kind: input, shape index: {}]   ;;  %s2202_s1 = inlined_call_operand.hbm [shape: bf16[18,36], index: 1, kind: input, shape index: {}]   ;;  %s2203_s2 = inlined_call_operand.hbm [shape: bf16[12,36], index: 2, kind: input, shape index: {}]   ;;  %s2204_s3 = inlined_call_operand.vmem [shape: f32[1,36], index: 3, kind: input, shape index: {}]   ;;  %s2205_s4 = inlined_call_operand.vmem [shape: f32[1,12], index: 4, kind: input, shape index: {}]   ;;  %s2206_s5 = inlined_call_operand.hbm [shape: bf16[12,36], index: 5, kind: input, shape index: {}]   ;;  %s2207_s6 = inlined_call_operand.hbm [shape: bf16[12,36], index: 6, kind: input, shape index: {}]   ;;  %s2208_s7 = inlined_call_operand.vmem [shape: f32[1,24], index: 7, kind: input, shape index: {}]   ;;  %s2209_s8 = inlined_call_operand.vmem [shape: f32[1,12], index: 8, kind: input, shape index: {}]   ;;  %s2210_s9 = inlined_call_operand.vmem [shape: f32[1,12], index: 9, kind: input, shape index: {}]   ;;  %s2211_s10 = inlined_call_operand.vmem [shape: f32[1,12], index: 10, kind: input, shape index: {}]   ;;  %s2212_s11 = inlined_call_operand.<no memory space> [shape: f32[1,1], index: 11, kind: input, shape index: {}]   ;;  %s2213_s12 = inlined_call_operand.vmem [shape: f32[8,8,1], index: 12, kind: output, shape index: {}]  }
   0x1   :  { %v17_v0 = vstv %s2212_s11 }
   0x2   :  { %18 = vst [vmem:[#allocation3] sm:$0x1] %v17_v0 }
   0x3   :  { %19 = vsyncpa [#allocation5], 0 }
   0x4   :  { %20 = vsyncpa [#allocation7], 0  ;;  %s39_s25 = sshll.u32 %s2202_s1, 4  ;;  %s40_s25 = int_to_ptr.hbm [resolvable:$true] %s39_s25 }
   0x5   :  { %21 = vsyncpa [#allocation10], 0  ;;  %s1751_s26 = smov [#allocation6]   ;;  %s69_s30 = sshll.u32 %s2206_s5, 4  ;;  %s70_s30 = int_to_ptr.hbm [resolvable:$true] %s69_s30 }
   0x6   :  { %s41_s27 = sshll.u32 %s1751_s26, 4  ;;  %s1752_s13 = smov 64   ;;  %s42_s27 = int_to_ptr.vmem [resolvable:$true] %s41_s27 }
   0x7   :  { %s1753_s14 = smov 4   ;;  %s1754_s11 = smov [#allocation9]  }
   0x8   :  { %47 = dma.hbm_to_vmem [thread:$0]  %s40_s25, 192, %s42_s27, [#allocation7], %s1752_s13, %s1752_s13, %s1753_s14  }
   0x9   :  { %s71_s15 = sshll.u32 %s1754_s11, 4  ;;  %s26_s17 = sshll.u32 %s2201_s0, 4  ;;  %s72_s15 = int_to_ptr.vmem [resolvable:$true] %s71_s15  ;;  %s27_s17 = int_to_ptr.hbm [resolvable:$true] %s26_s17 }
   0xa   :  { %77 = dma.hbm_to_vmem [thread:$0]  %s70_s30, 128, %s72_s15, [#allocation10], %s1752_s13, %s1752_s13, %s1753_s14  }
   0xb   :  { %s1755_s5 = smov [#allocation4]   ;;  %s52_s21 = sshll.u32 %s2203_s2, 4  ;;  %s53_s21 = int_to_ptr.hbm [resolvable:$true] %s52_s21 }
   0xc   :  { %s28_s18 = sshll.u32 %s1755_s5, 4  ;;  %s1756_s22 = smov 128   ;;  %s29_s18 = int_to_ptr.vmem [resolvable:$true] %s28_s18 }
   0xd   :  { %s1757_s23 = smov 8   ;;  %s1758_s24 = smov [#allocation8]  }
   0xe   :  { %34 = dma.hbm_to_vmem [thread:$0]  %s27_s17, 1024, %s29_s18, [#allocation5], %s1756_s22, %s1756_s22, %s1757_s23  }
   0xf   :  { %s54_s25 = sshll.u32 %s1758_s24, 4  ;;  %s82_s27 = sshll.u32 %s2207_s6, 4  ;;  %s55_s25 = int_to_ptr.vmem [resolvable:$true] %s54_s25  ;;  %s83_s27 = int_to_ptr.hbm [resolvable:$true] %s82_s27 }
  0x10   :  { %60 = dma.hbm_to_vmem [thread:$0]  %s53_s21, 128, %s55_s25, [#allocation7], %s1752_s13, %s1752_s13, %s1753_s14  }
  0x11   :  { %s1759_s28 = smov [#allocation11]  }
  0x12   :  { %s84_s29 = sshll.u32 %s1759_s28, 4  ;;  %s85_s29 = int_to_ptr.vmem [resolvable:$true] %s84_s29 }
  0x13   :  { %90 = dma.hbm_to_vmem [thread:$0]  %s83_s27, 128, %s85_s29, [#allocation10], %s1752_s13, %s1752_s13, %s1753_s14  }
  0x14   :  { %1745 = dma.done.wait [#allocation5], 1024  }
  0x15   :  { %1746 = vsyncadd [#allocation5], 4294966272 }
  0x16   :  { %1747 = dma.done.wait [#allocation7], 320  }
  0x17   :  { %1748 = vsyncadd [#allocation7], 4294966976 }
  0x18   :  { %1749 = dma.done.wait [#allocation10], 256  }
  0x19   :  { %1750 = vsyncadd [#allocation10], 4294967040  ;;  %vm224_vm0 = vcmask 1045504   ;;  %v1455_v1 = vld [vmem:[#allocation8] sm:$0xf]  ;;  %vm182_vm1 = vcmask 1040384  }
  0x1a   :  { %v1503_v2 = vld [vmem:[#allocation8] sm:$0x30]  ;;  %v155_v3 = vld [vmem:[#allocation6 + $0x8] sm:$0x1]  ;;  %v1520_v6 = vld [vmem:[%s2205_s4] ss:$0 sm:$0xff] }
  0x1b   :  { %v1456_v4 = vor.u32 %v1503_v2, %v1455_v1  ;;  %v165_v5 = vunpack.c.l.b16 %v155_v3  ;;  %s1760_s30 = smov 24   ;;  %v1506_v10 = vld [vmem:[#allocation6] sm:$0xff]  ;;  %v142_v12 = vld [vmem:[#allocation4 + $0x8] sm:$0xff]  ;;  %v1761_v13 = vmov 0   ;;  %vm169_vm2 = vcmask 146432   ;;  %s1762_s4 = smov 104  }
  0x1c   :  { %282 = vrot.lane.b32.xlu0 %v1520_v6, %s1760_s30  ;;  %v141_v11 = vld [vmem:[#allocation4] sm:$0xff]  ;;  %v1878_v19 = vld [vmem:[%s2204_s3] ss:$0 sm:$0xff]  ;;  %s1763_s11 = smov 116   ;;  %v1464_v45 = vld [vmem:[#allocation9] sm:$0xf] }
  0x1d   :  { %v1863_v7 = vsel %vm224_vm0, %v1456_v4, 0  ;;  %v167_v8 = vpack.c.b16 %v165_v5, %v165_v5  ;;  %v149_v14 = vpack.c.bf16 %v142_v12, %v141_v11  ;;  %v1459_v41 = vld [vmem:[#allocation11] sm:$0xf]  ;;  %v1505_v42 = vld [vmem:[#allocation11] sm:$0x30]  ;;  %vm220_vm7 = vcmask 97280  }
  0x1e   :  { %235 = vmatpush.bf16.msra.mxu1 %v1863_v7  ;;  %v1460_v43 = vor.u32 %v1505_v42, %v1459_v41  ;;  %v1504_v46 = vld [vmem:[#allocation9] sm:$0x30]  ;;  %v1522_v55 = vld [vmem:[%s2210_s9] ss:$0 sm:$0xff] }
  0x1f   :  { %v184_v9 = vsel %vm182_vm1, %v167_v8, 0  ;;  %v1465_v47 = vor.u32 %v1504_v46, %v1464_v45  ;;  %v1523_v56 = vld [vmem:[%s2209_s8] ss:$0 sm:$0xff] }
  0x20   :  { %192 = vmatpush.bf16.msra.mxu0 %v184_v9  ;;  %v1884_v44 = vsel %vm224_vm0, %v1460_v43, 0  ;;  %v1921_v0 = vld [vmem:[%s2208_s7] ss:$0 sm:$0xff] }
  0x21   :  { %236 = vmatmul.bf16.vlgmr.msra.gmra.mxu1 %v1761_v13  ;;  %256 = vmatpush.bf16.msra.mxu2 %v1884_v44  ;;  %v1891_v48 = vsel %vm224_vm0, %v1465_v47, 0 }
  0x22   :  { %393 = vmatpush.bf16.msrb.mxu1 %v1863_v7  ;;  %327 = vmatpush.bf16.msra.mxu3 %v1891_v48 }
  0x24   :  { %193 = vmatpush.bf16.msra.mxu0 %v1506_v10  ;;  %257 = vmatmul.bf16.vlgmr.msra.gmra.mxu2 %v1761_v13 }
  0x25   :  { %413 = vmatpush.bf16.msrb.mxu2 %v1884_v44 }
  0x26   :  { %534 = vmatpush.bf16.msra.mxu1 %v1863_v7  ;;  %473 = vmatpush.bf16.msrb.mxu3 %v1891_v48 }
  0x27   :  { %1449 = vmatmul.msk.bf16.vlgmr.msra.gmra.mxu0 %vm169_vm2, %v149_v14 }
  0x28   :  { %957 = vmatpush.bf16.msrb.mxu0 %v1863_v7 }
  0x29   :  { %554 = vmatpush.bf16.msra.mxu2 %v1884_v44 }
  0x2c   :  { %1118 = vmatpush.bf16.msra.mxu0 %v1884_v44 }
  0x8e   :  { %v1871_v15 = vpop.permute.xlu0 %282 }
  0x9e   :  { %v237_v16 = vpop.f32.mrf.mxu1 }
  0x9f   :  { %v285_v17 = vadd.f32 %v1871_v15, %v237_v16 }
  0xa1   :  { %287 = vrot.lane.b32.xlu0 %v285_v17, %s1762_s4 }
  0xa4   :  { %v195_v20 = vpop.f32.mrf.mxu0 }
  0xa5   :  { %v196_v21 = vadd.f32 %v1878_v19, %v195_v20 }
  0xa6   :  { %v239_v18 = vpop.f32.mrf.mxu1 }
  0xa7   :  { %v262_v22 = vadd.f32 %v237_v16, %v196_v21  ;;  %v258_v59 = vpop.f32.mrf.mxu2 }
  0xa9   :  { %v1461_v23 = vmul.f32 -1.442695, %v262_v22 }
  0xab   :  { %1527 = vpow2.f32 %v1461_v23 }
  0xaf   :  { %v260_v61 = vpop.f32.mrf.mxu2 }
  0xb0   :  { %v144_v61 = vld [vmem:[#allocation4 + $0x18] sm:$0xff] }
  0xb1   :  { %v1528_v24 = vpop.eup %1527 }
  0xb2   :  { %v266_v25 = vadd.f32 1.0, %v1528_v24  ;;  %v197_v24 = vpop.f32.mrf.mxu0 }
  0xb4   :  { %1529 = vrcp.f32 %v266_v25  ;;  %v278_v31 = vand.u32 2147483648, %v266_v25  ;;  %vm272_vm4 = vweird.f32 %v266_v25  ;;  %v276_v32 = vand.u32 2147483647, %v266_v25 }
  0xb6   :  { %v279_v34 = vor.u32 1.1754944e-38, %v278_v31  ;;  %vm277_vm6 = vcmp.eq.f32.partialorder %v276_v32, 8.507059e+37 }
  0xba   :  { %v1530_v26 = vpop.eup %1529 }
  0xbb   :  { %v268_v27 = vmul.f32 %v1530_v26, %v266_v25  ;;  %vm273_vm3 = vweird.f32 %v1530_v26  ;;  %v198_v25 = vadd.f32 %v1878_v19, %v197_v24 }
  0xbc   :  { %vm274_vm5 = vmor %vm272_vm4, %vm273_vm3 }
  0xbd   :  { %v269_v28 = vsub.f32 1.0, %v268_v27 }
  0xbf   :  { %v270_v29 = vmul.f32 %v1530_v26, %v269_v28 }
  0xc1   :  { %v271_v30 = vadd.f32 %v1530_v26, %v270_v29 }
  0xc3   :  { %v275_v33 = vsel %vm274_vm5, %v1530_v26, %v271_v30 }
  0xc4   :  { %v280_v36 = vsel %vm277_vm6, %v279_v34, %v275_v33 }
  0xc5   :  { %v297_v49 = vsub.f32 1.0, %v280_v36  ;;  %v303_v51 = vmul.f32 0.0, %v280_v36 }
 0x113   :  { %v288_v35 = vpop.permute.xlu0 %287 }
 0x114   :  { %v290_v37 = vmul.f32 %v288_v35, %v280_v36 }
 0x116   :  { %292 = vrot.lane.b32.xlu1 %v290_v37, %s1760_s30 }
 0x188   :  { %v293_v38 = vpop.permute.xlu1 %292 }
 0x189   :  { %v295_v39 = vadd.f32 %v293_v38, %v196_v21 }
 0x18b   :  { %1531 = vtanh.f32 %v295_v39 }
 0x191   :  { %v1532_v40 = vpop.eup %1531 }
 0x192   :  { %299 = vrot.lane.b32.xlu1 %v1532_v40, %s1763_s11 }
 0x204   :  { %v300_v50 = vpop.permute.xlu1 %299 }
 0x205   :  { %v302_v52 = vmul.f32 %v300_v50, %v297_v49 }
 0x207   :  { %v1895_v53 = vadd.f32 %v303_v51, %v302_v52 }
 0x209   :  { %v305_v54 = vpack.c.bf16 %v1895_v53, %v1895_v53 }
 0x20b   :  { %307 = vrot.lane.b32.xlu2 %v305_v54, %s1763_s11 }
 0x213   :  { %358 = vrot.lane.b32.xlu2 %v1522_v55, %s1760_s30 }
 0x21b   :  { %354 = vrot.lane.b32.xlu2 %v1523_v56, %s1760_s30 }
 0x265   :  { %v308_v57 = vpop.permute.xlu2 %307 }
 0x266   :  { %1466 = vmatmul.msk.bf16.vlgmr.msra.gmra.mxu3 %vm220_vm7, %v308_v57  ;;  %1468 = vmatmul.msk.bf16.vlgmr.msrb.gmra.mxu1 %vm220_vm7, %v308_v57 }
 0x267   :  { %614 = vmatpush.bf16.msra.mxu3 %v1891_v48  ;;  %675 = vmatpush.bf16.msrb.mxu1 %v1863_v7 }
 0x26d   :  { %v1912_v58 = vpop.permute.xlu2 %358 }
 0x26e   :  { %v361_v60 = vadd.f32 %v1912_v58, %v258_v59 }
 0x270   :  { %363 = vrot.lane.b32.xlu0 %v361_v60, %s1762_s4  ;;  %v143_v60 = vld [vmem:[#allocation4 + $0x10] sm:$0xff] }
 0x275   :  { %v1927_v42 = vpop.permute.xlu2 %354 }
 0x2e2   :  { %v364_v20 = vpop.permute.xlu0 %363 }
 0x2e3   :  { %v395_v62 = vpop.f32.mrf.mxu1 }
 0x2e4   :  { %v439_v63 = vadd.f32 %v395_v62, %v1871_v15  ;;  %v419_v26 = vadd.f32 %v395_v62, %v198_v25  ;;  %v150_v62 = vpack.c.bf16 %v144_v61, %v143_v60 }
 0x2e6   :  { %441 = vrot.lane.b32.xlu1 %v439_v63, %s1762_s4  ;;  %v1470_v27 = vmul.f32 -1.442695, %v419_v26  ;;  %1450 = vmatmul.msk.bf16.gmra.mxu0 %vm169_vm2, %v150_v62 }
 0x2e9   :  { %v329_v1 = vpop.f32.mrf.mxu3 }
 0x2ea   :  { %v333_v2 = vadd.f32 %v329_v1, %v258_v59  ;;  %v357_v43 = vadd.f32 %v1927_v42, %v329_v1 }
 0x2eb   :  { %v397_v3 = vpop.f32.mrf.mxu1 }
 0x2ec   :  { %v334_v4 = vadd.f32 %v1921_v0, %v333_v2 }
 0x2ee   :  { %v1467_v5 = vmul.f32 -1.442695, %v334_v4 }
 0x2f0   :  { %1533 = vpow2.f32 %v1467_v5 }
 0x2f1   :  { %v331_v6 = vpop.f32.mrf.mxu3 }
 0x2f6   :  { %v1534_v8 = vpop.eup %1533 }
 0x2f7   :  { %v338_v9 = vadd.f32 1.0, %v1534_v8 }
 0x2f9   :  { %1535 = vrcp.f32 %v338_v9  ;;  %v350_v13 = vand.u32 2147483648, %v338_v9  ;;  %v348_v16 = vand.u32 2147483647, %v338_v9  ;;  %vm344_vm9 = vweird.f32 %v338_v9 }
 0x2fa   :  { %1537 = vpow2.f32 %v1470_v27 }
 0x2fb   :  { %v351_v18 = vor.u32 1.1754944e-38, %v350_v13  ;;  %vm349_vm11 = vcmp.eq.f32.partialorder %v348_v16, 8.507059e+37 }
 0x2ff   :  { %v1536_v10 = vpop.eup %1535 }
 0x300   :  { %v340_v11 = vmul.f32 %v1536_v10, %v338_v9  ;;  %vm345_vm8 = vweird.f32 %v1536_v10  ;;  %v1538_v28 = vpop.eup %1537 }
 0x301   :  { %vm346_vm10 = vmor %vm344_vm9, %vm345_vm8  ;;  %v423_v29 = vadd.f32 1.0, %v1538_v28 }
 0x302   :  { %v341_v12 = vsub.f32 1.0, %v340_v11 }
 0x303   :  { %1539 = vrcp.f32 %v423_v29  ;;  %v435_v35 = vand.u32 2147483648, %v423_v29  ;;  %vm429_vm13 = vweird.f32 %v423_v29  ;;  %v433_v36 = vand.u32 2147483647, %v423_v29 }
 0x304   :  { %v342_v14 = vmul.f32 %v1536_v10, %v341_v12 }
 0x305   :  { %v436_v38 = vor.u32 1.1754944e-38, %v435_v35  ;;  %vm434_vm15 = vcmp.eq.f32.partialorder %v433_v36, 8.507059e+37 }
 0x306   :  { %v343_v17 = vadd.f32 %v1536_v10, %v342_v14 }
 0x308   :  { %v347_v21 = vsel %vm346_vm10, %v1536_v10, %v343_v17 }
 0x309   :  { %v352_v22 = vsel %vm349_vm11, %v351_v18, %v347_v21  ;;  %v1540_v30 = vpop.eup %1539 }
 0x30a   :  { %v366_v23 = vmul.f32 %v364_v20, %v352_v22  ;;  %v425_v31 = vmul.f32 %v1540_v30, %v423_v29  ;;  %vm430_vm12 = vweird.f32 %v1540_v30  ;;  %v373_v52 = vsub.f32 1.0, %v352_v22 }
 0x30b   :  { %vm431_vm14 = vmor %vm429_vm13, %vm430_vm12  ;;  %v379_v55 = vmul.f32 0.0, %v352_v22 }
 0x30c   :  { %368 = vrot.lane.b32.xlu0 %v366_v23, %s1760_s30  ;;  %v426_v32 = vsub.f32 1.0, %v425_v31 }
 0x30e   :  { %v427_v33 = vmul.f32 %v1540_v30, %v426_v32 }
 0x310   :  { %v428_v34 = vadd.f32 %v1540_v30, %v427_v33 }
 0x312   :  { %v432_v37 = vsel %vm431_vm14, %v1540_v30, %v428_v34 }
 0x313   :  { %v437_v40 = vsel %vm434_vm15, %v436_v38, %v432_v37 }
 0x314   :  { %v451_v63 = vsub.f32 1.0, %v437_v40  ;;  %v457_v2 = vmul.f32 %v437_v40, %v1895_v53 }
 0x358   :  { %v442_v39 = vpop.permute.xlu1 %441 }
 0x359   :  { %v444_v41 = vmul.f32 %v442_v39, %v437_v40 }
 0x35b   :  { %446 = vrot.lane.b32.xlu1 %v444_v41, %s1760_s30 }
 0x363   :  { %v200_v35 = vpop.f32.mrf.mxu0 }
 0x364   :  { %v201_v36 = vadd.f32 %v1878_v19, %v200_v35 }
 0x37e   :  { %v369_v45 = vpop.permute.xlu0 %368 }
 0x37f   :  { %v371_v46 = vadd.f32 %v369_v45, %v357_v43 }
 0x381   :  { %1541 = vtanh.f32 %v371_v46 }
 0x387   :  { %v1542_v47 = vpop.eup %1541 }
 0x388   :  { %375 = vrot.lane.b32.xlu2 %v1542_v47, %s1763_s11 }
 0x3cd   :  { %v447_v49 = vpop.permute.xlu1 %446 }
 0x3ce   :  { %v449_v50 = vadd.f32 %v447_v49, %v198_v25 }
 0x3d0   :  { %1543 = vtanh.f32 %v449_v50 }
 0x3d6   :  { %v1544_v51 = vpop.eup %1543 }
 0x3d7   :  { %453 = vrot.lane.b32.xlu0 %v1544_v51, %s1763_s11 }
 0x3e2   :  { %v376_v54 = vpop.permute.xlu2 %375 }
 0x3e3   :  { %v378_v56 = vmul.f32 %v376_v54, %v373_v52 }
 0x3e5   :  { %v1932_v57 = vadd.f32 %v379_v55, %v378_v56 }
 0x3e7   :  { %v399_v59 = vpack.c.bf16 %v1932_v57, %v1932_v57 }
 0x3e9   :  { %401 = vrot.lane.b32.xlu1 %v399_v59, %s1763_s11 }
 0x449   :  { %v454_v1 = vpop.permute.xlu0 %453 }
 0x44a   :  { %v456_v3 = vmul.f32 %v454_v1, %v451_v63 }
 0x44c   :  { %v1939_v4 = vadd.f32 %v457_v2, %v456_v3 }
 0x44e   :  { %v459_v5 = vpack.c.bf16 %v1939_v4, %v1939_v4 }
 0x450   :  { %461 = vrot.lane.b32.xlu2 %v459_v5, %s1763_s11 }
 0x45b   :  { %v402_v6 = vpop.permute.xlu1 %401 }
 0x45c   :  { %1469 = vmatmul.msk.bf16.vlgmr.msrb.gmra.mxu2 %vm220_vm7, %v402_v6 }
 0x45d   :  { %695 = vmatpush.bf16.msrb.mxu2 %v1884_v44 }
 0x4aa   :  { %v462_v8 = vpop.permute.xlu2 %461 }
 0x4ab   :  { %1471 = vmatmul.msk.bf16.vlgmr.msrb.gmra.mxu3 %vm220_vm7, %v462_v8  ;;  %1473 = vmatmul.msk.bf16.vlgmr.msra.gmra.mxu1 %vm220_vm7, %v462_v8 }
 0x4ac   :  { %755 = vmatpush.bf16.msrb.mxu3 %v1891_v48  ;;  %816 = vmatpush.bf16.msra.mxu1 %v1863_v7 }
 0x4df   :  { %v415_v53 = vpop.f32.mrf.mxu2 }
 0x4e0   :  { %v501_v9 = vadd.f32 %v415_v53, %v1912_v58 }
 0x4e2   :  { %503 = vrot.lane.b32.xlu0 %v501_v9, %s1762_s4 }
 0x4e7   :  { %v417_v10 = vpop.f32.mrf.mxu2 }
 0x528   :  { %v536_v11 = vpop.f32.mrf.mxu1 }
 0x529   :  { %v580_v12 = vadd.f32 %v536_v11, %v1871_v15  ;;  %v560_v37 = vadd.f32 %v536_v11, %v201_v36 }
 0x52b   :  { %582 = vrot.lane.b32.xlu1 %v580_v12, %s1762_s4  ;;  %v1475_v38 = vmul.f32 -1.442695, %v560_v37 }
 0x52e   :  { %v475_v13 = vpop.f32.mrf.mxu3 }
 0x52f   :  { %v479_v14 = vadd.f32 %v475_v13, %v415_v53  ;;  %v500_v59 = vadd.f32 %v475_v13, %v1927_v42 }
 0x530   :  { %v538_v16 = vpop.f32.mrf.mxu1 }
 0x531   :  { %v480_v17 = vadd.f32 %v1921_v0, %v479_v14 }
 0x533   :  { %v1472_v18 = vmul.f32 -1.442695, %v480_v17 }
 0x535   :  { %1545 = vpow2.f32 %v1472_v18 }
 0x536   :  { %v477_v20 = vpop.f32.mrf.mxu3 }
 0x53b   :  { %v1546_v21 = vpop.eup %1545 }
 0x53c   :  { %v484_v22 = vadd.f32 1.0, %v1546_v21 }
 0x53e   :  { %1547 = vrcp.f32 %v484_v22  ;;  %v496_v28 = vand.u32 2147483648, %v484_v22  ;;  %vm490_vm1 = vweird.f32 %v484_v22  ;;  %v494_v29 = vand.u32 2147483647, %v484_v22 }
 0x53f   :  { %1549 = vpow2.f32 %v1475_v38 }
 0x540   :  { %v497_v31 = vor.u32 1.1754944e-38, %v496_v28  ;;  %vm495_vm4 = vcmp.eq.f32.partialorder %v494_v29, 8.507059e+37 }
 0x544   :  { %v1548_v23 = vpop.eup %1547 }
 0x545   :  { %v486_v24 = vmul.f32 %v1548_v23, %v484_v22  ;;  %vm491_vm0 = vweird.f32 %v1548_v23  ;;  %v1550_v39 = vpop.eup %1549 }
 0x546   :  { %vm492_vm3 = vmor %vm490_vm1, %vm491_vm0  ;;  %v564_v40 = vadd.f32 1.0, %v1550_v39 }
 0x547   :  { %v487_v25 = vsub.f32 1.0, %v486_v24 }
 0x548   :  { %1551 = vrcp.f32 %v564_v40  ;;  %v576_v49 = vand.u32 2147483648, %v564_v40  ;;  %vm570_vm6 = vweird.f32 %v564_v40  ;;  %v574_v50 = vand.u32 2147483647, %v564_v40 }
 0x549   :  { %v488_v26 = vmul.f32 %v1548_v23, %v487_v25 }
 0x54a   :  { %v577_v52 = vor.u32 1.1754944e-38, %v576_v49  ;;  %vm575_vm9 = vcmp.eq.f32.partialorder %v574_v50, 8.507059e+37 }
 0x54b   :  { %v489_v27 = vadd.f32 %v1548_v23, %v488_v26 }
 0x54d   :  { %v493_v30 = vsel %vm492_vm3, %v1548_v23, %v489_v27 }
 0x54e   :  { %v498_v33 = vsel %vm495_vm4, %v497_v31, %v493_v30  ;;  %v1552_v41 = vpop.eup %1551 }
 0x54f   :  { %v566_v43 = vmul.f32 %v1552_v41, %v564_v40  ;;  %vm571_vm5 = vweird.f32 %v1552_v41  ;;  %v513_v3 = vsub.f32 1.0, %v498_v33  ;;  %v519_v6 = vmul.f32 %v498_v33, %v1932_v57 }
 0x550   :  { %vm572_vm8 = vmor %vm570_vm6, %vm571_vm5 }
 0x551   :  { %v567_v45 = vsub.f32 1.0, %v566_v43 }
 0x553   :  { %v568_v46 = vmul.f32 %v1552_v41, %v567_v45 }
 0x554   :  { %v504_v32 = vpop.permute.xlu0 %503 }
 0x555   :  { %v506_v34 = vmul.f32 %v504_v32, %v498_v33  ;;  %v569_v47 = vadd.f32 %v1552_v41, %v568_v46  ;;  %v202_v46 = vpop.f32.mrf.mxu0 }
 0x557   :  { %508 = vrot.lane.b32.xlu2 %v506_v34, %s1760_s30  ;;  %v573_v51 = vsel %vm572_vm8, %v1552_v41, %v569_v47  ;;  %v203_v47 = vadd.f32 %v1878_v19, %v202_v46 }
 0x558   :  { %v578_v55 = vsel %vm575_vm9, %v577_v52, %v573_v51 }
 0x559   :  { %v592_v10 = vsub.f32 1.0, %v578_v55  ;;  %v598_v12 = vmul.f32 %v578_v55, %v1939_v4 }
 0x59d   :  { %v583_v54 = vpop.permute.xlu1 %582 }
 0x59e   :  { %v585_v56 = vmul.f32 %v583_v54, %v578_v55 }
 0x5a0   :  { %587 = vrot.lane.b32.xlu0 %v585_v56, %s1760_s30 }
 0x5b1   :  { %v509_v60 = vpop.permute.xlu2 %508 }
 0x5b2   :  { %v511_v61 = vadd.f32 %v509_v60, %v500_v59 }
 0x5b4   :  { %1553 = vtanh.f32 %v511_v61 }
 0x5ba   :  { %v1554_v62 = vpop.eup %1553 }
 0x5bb   :  { %515 = vrot.lane.b32.xlu1 %v1554_v62, %s1763_s11 }
 0x612   :  { %v588_v63 = vpop.permute.xlu0 %587 }
 0x613   :  { %v590_v1 = vadd.f32 %v588_v63, %v201_v36 }
 0x615   :  { %1555 = vtanh.f32 %v590_v1 }
 0x61b   :  { %v1556_v2 = vpop.eup %1555 }
 0x61c   :  { %594 = vrot.lane.b32.xlu2 %v1556_v2, %s1763_s11 }
 0x62d   :  { %v516_v5 = vpop.permute.xlu1 %515 }
 0x62e   :  { %v518_v8 = vmul.f32 %v516_v5, %v513_v3 }
 0x630   :  { %v1962_v53 = vadd.f32 %v519_v6, %v518_v8 }
 0x632   :  { %v540_v9 = vpack.c.bf16 %v1962_v53, %v1962_v53 }
 0x634   :  { %542 = vrot.lane.b32.xlu0 %v540_v9, %s1763_s11 }
 0x676   :  { %v595_v11 = vpop.permute.xlu2 %594 }
 0x677   :  { %v597_v13 = vmul.f32 %v595_v11, %v592_v10 }
 0x679   :  { %v1968_v14 = vadd.f32 %v598_v12, %v597_v13 }
 0x67b   :  { %v600_v16 = vpack.c.bf16 %v1968_v14, %v1968_v14 }
 0x67d   :  { %602 = vrot.lane.b32.xlu1 %v600_v16, %s1763_s11 }
 0x6a6   :  { %v543_v17 = vpop.permute.xlu0 %542 }
 0x6a7   :  { %1474 = vmatmul.msk.bf16.vlgmr.msra.gmra.mxu2 %vm220_vm7, %v543_v17 }
 0x6a8   :  { %836 = vmatpush.bf16.msra.mxu2 %v1884_v44 }
 0x6ef   :  { %v603_v18 = vpop.permute.xlu1 %602 }
 0x6f0   :  { %1476 = vmatmul.msk.bf16.vlgmr.msra.gmra.mxu3 %vm220_vm7, %v603_v18  ;;  %1478 = vmatmul.msk.bf16.vlgmr.msrb.gmra.mxu1 %vm220_vm7, %v603_v18 }
 0x6f1   :  { %896 = vmatpush.bf16.msra.mxu3 %v1891_v48  ;;  %977 = vmatpush.bf16.msrb.mxu1 %v1884_v44 }
 0x72a   :  { %v556_v4 = vpop.f32.mrf.mxu2 }
 0x72b   :  { %v642_v20 = vadd.f32 %v556_v4, %v1912_v58 }
 0x72d   :  { %644 = vrot.lane.b32.xlu2 %v642_v20, %s1762_s4 }
 0x732   :  { %v558_v21 = vpop.f32.mrf.mxu2 }
 0x76d   :  { %v677_v22 = vpop.f32.mrf.mxu1 }
 0x76e   :  { %v721_v23 = vadd.f32 %v677_v22, %v1871_v15  ;;  %v701_v49 = vadd.f32 %v677_v22, %v203_v47 }
 0x770   :  { %723 = vrot.lane.b32.xlu0 %v721_v23, %s1762_s4  ;;  %v1480_v50 = vmul.f32 -1.442695, %v701_v49 }
 0x773   :  { %v616_v24 = vpop.f32.mrf.mxu3 }
 0x774   :  { %v620_v25 = vadd.f32 %v616_v24, %v556_v4  ;;  %v641_v6 = vadd.f32 %v616_v24, %v1927_v42 }
 0x775   :  { %v679_v26 = vpop.f32.mrf.mxu1 }
 0x776   :  { %v621_v27 = vadd.f32 %v1921_v0, %v620_v25 }
 0x778   :  { %v1477_v28 = vmul.f32 -1.442695, %v621_v27 }
 0x77a   :  { %1557 = vpow2.f32 %v1477_v28  ;;  %v145_v28 = vld [vmem:[#allocation4 + $0x20] sm:$0xff] }
 0x77b   :  { %v618_v29 = vpop.f32.mrf.mxu3 }
 0x77c   :  { %v146_v29 = vld [vmem:[#allocation4 + $0x28] sm:$0xff] }
 0x780   :  { %v1558_v30 = vpop.eup %1557 }
 0x781   :  { %v625_v31 = vadd.f32 1.0, %v1558_v30  ;;  %v151_v30 = vpack.c.bf16 %v146_v29, %v145_v28 }
 0x783   :  { %1559 = vrcp.f32 %v625_v31  ;;  %v637_v35 = vand.u32 2147483648, %v625_v31  ;;  %v635_v37 = vand.u32 2147483647, %v625_v31  ;;  %vm631_vm11 = vweird.f32 %v625_v31  ;;  %1451 = vmatmul.msk.bf16.gmra.mxu0 %vm169_vm2, %v151_v30 }
 0x784   :  { %1561 = vpow2.f32 %v1480_v50 }
 0x785   :  { %v638_v39 = vor.u32 1.1754944e-38, %v637_v35  ;;  %vm636_vm13 = vcmp.eq.f32.partialorder %v635_v37, 8.507059e+37 }
 0x787   :  { %v645_v41 = vpop.permute.xlu2 %644 }
 0x789   :  { %v1560_v32 = vpop.eup %1559 }
 0x78a   :  { %v627_v33 = vmul.f32 %v1560_v32, %v625_v31  ;;  %vm632_vm10 = vweird.f32 %v1560_v32  ;;  %v1562_v51 = vpop.eup %1561 }
 0x78b   :  { %vm633_vm12 = vmor %vm631_vm11, %vm632_vm10  ;;  %v705_v52 = vadd.f32 1.0, %v1562_v51 }
 0x78c   :  { %v628_v34 = vsub.f32 1.0, %v627_v33 }
 0x78d   :  { %1563 = vrcp.f32 %v705_v52  ;;  %v717_v61 = vand.u32 2147483648, %v705_v52  ;;  %vm711_vm15 = vweird.f32 %v705_v52  ;;  %v715_v62 = vand.u32 2147483647, %v705_v52 }
 0x78e   :  { %v629_v36 = vmul.f32 %v1560_v32, %v628_v34 }
 0x78f   :  { %v718_v1 = vor.u32 1.1754944e-38, %v717_v61  ;;  %vm716_vm1 = vcmp.eq.f32.partialorder %v715_v62, 8.507059e+37 }
 0x790   :  { %v630_v38 = vadd.f32 %v1560_v32, %v629_v36 }
 0x792   :  { %v634_v40 = vsel %vm633_vm12, %v1560_v32, %v630_v38 }
 0x793   :  { %v639_v43 = vsel %vm636_vm13, %v638_v39, %v634_v40  ;;  %v1564_v54 = vpop.eup %1563 }
 0x794   :  { %v647_v45 = vmul.f32 %v645_v41, %v639_v43  ;;  %v707_v55 = vmul.f32 %v1564_v54, %v705_v52  ;;  %vm712_vm14 = vweird.f32 %v1564_v54  ;;  %v654_v16 = vsub.f32 1.0, %v639_v43 }
 0x795   :  { %vm713_vm0 = vmor %vm711_vm15, %vm712_vm14  ;;  %v660_v18 = vmul.f32 %v639_v43, %v1962_v53 }
 0x796   :  { %649 = vrot.lane.b32.xlu1 %v647_v45, %s1760_s30  ;;  %v708_v56 = vsub.f32 1.0, %v707_v55 }
 0x798   :  { %v709_v59 = vmul.f32 %v1564_v54, %v708_v56 }
 0x79a   :  { %v710_v60 = vadd.f32 %v1564_v54, %v709_v59 }
 0x79c   :  { %v714_v63 = vsel %vm713_vm0, %v1564_v54, %v710_v60 }
 0x79d   :  { %v719_v3 = vsel %vm716_vm1, %v718_v1, %v714_v63 }
 0x79e   :  { %v733_v22 = vsub.f32 1.0, %v719_v3  ;;  %v739_v24 = vmul.f32 %v719_v3, %v1968_v14 }
 0x7e2   :  { %v724_v2 = vpop.permute.xlu0 %723 }
 0x7e3   :  { %v726_v5 = vmul.f32 %v724_v2, %v719_v3 }
 0x7e5   :  { %728 = vrot.lane.b32.xlu2 %v726_v5, %s1760_s30 }
 0x800   :  { %v205_v52 = vpop.f32.mrf.mxu0 }
 0x801   :  { %v206_v59 = vadd.f32 %v1878_v19, %v205_v52 }
 0x808   :  { %v650_v8 = vpop.permute.xlu1 %649  ;;  %v207_v52 = vpop.f32.mrf.mxu0 }
 0x809   :  { %v652_v9 = vadd.f32 %v650_v8, %v641_v6 }
 0x80b   :  { %1565 = vtanh.f32 %v652_v9 }
 0x811   :  { %v1566_v10 = vpop.eup %1565 }
 0x812   :  { %656 = vrot.lane.b32.xlu0 %v1566_v10, %s1763_s11 }
 0x83f   :  { %v729_v11 = vpop.permute.xlu2 %728 }
 0x840   :  { %v731_v12 = vadd.f32 %v729_v11, %v203_v47 }
 0x842   :  { %1567 = vtanh.f32 %v731_v12 }
 0x848   :  { %v1568_v13 = vpop.eup %1567 }
 0x849   :  { %735 = vrot.lane.b32.xlu1 %v1568_v13, %s1763_s11 }
 0x884   :  { %v657_v17 = vpop.permute.xlu0 %656 }
 0x885   :  { %v659_v4 = vmul.f32 %v657_v17, %v654_v16 }
 0x887   :  { %v1991_v20 = vadd.f32 %v660_v18, %v659_v4 }
 0x889   :  { %v681_v21 = vpack.c.bf16 %v1991_v20, %v1991_v20 }
 0x88b   :  { %683 = vrot.lane.b32.xlu2 %v681_v21, %s1763_s11 }
 0x8bb   :  { %v736_v23 = vpop.permute.xlu1 %735 }
 0x8bc   :  { %v738_v25 = vmul.f32 %v736_v23, %v733_v22 }
 0x8be   :  { %v1997_v26 = vadd.f32 %v739_v24, %v738_v25 }
 0x8c0   :  { %v741_v27 = vpack.c.bf16 %v1997_v26, %v1997_v26 }
 0x8c2   :  { %743 = vrot.lane.b32.xlu0 %v741_v27, %s1763_s11 }
 0x8e5   :  { %v684_v31 = vpop.permute.xlu2 %683 }
 0x8e6   :  { %1479 = vmatmul.msk.bf16.vlgmr.msrb.gmra.mxu2 %vm220_vm7, %v684_v31 }
 0x8e7   :  { %1037 = vmatpush.bf16.msrb.mxu2 %v1891_v48 }
 0x934   :  { %v744_v32 = vpop.permute.xlu0 %743 }
 0x935   :  { %1481 = vmatmul.msk.bf16.vlgmr.msrb.gmra.mxu3 %vm220_vm7, %v744_v32  ;;  %1483 = vmatmul.msk.bf16.vlgmr.msra.gmra.mxu1 %vm220_vm7, %v744_v32 }
 0x936   :  { %1098 = vmatpush.bf16.msrb.mxu3 %v1863_v7  ;;  %1178 = vmatpush.bf16.msra.mxu1 %v1891_v48 }
 0x969   :  { %v697_v14 = vpop.f32.mrf.mxu2 }
 0x96a   :  { %v783_v33 = vadd.f32 %v697_v14, %v1912_v58 }
 0x96c   :  { %785 = vrot.lane.b32.xlu1 %v783_v33, %s1762_s4 }
 0x971   :  { %v699_v34 = vpop.f32.mrf.mxu2 }
 0x9b2   :  { %v818_v35 = vpop.f32.mrf.mxu1 }
 0x9b3   :  { %v862_v36 = vadd.f32 %v818_v35, %v1871_v15  ;;  %v842_v62 = vadd.f32 %v818_v35, %v206_v59 }
 0x9b5   :  { %864 = vrot.lane.b32.xlu2 %v862_v36, %s1762_s4  ;;  %v1485_v3 = vmul.f32 -1.442695, %v842_v62 }
 0x9b8   :  { %v757_v37 = vpop.f32.mrf.mxu3 }
 0x9b9   :  { %v761_v38 = vadd.f32 %v757_v37, %v697_v14  ;;  %v782_v23 = vadd.f32 %v757_v37, %v1927_v42 }
 0x9ba   :  { %v820_v39 = vpop.f32.mrf.mxu1 }
 0x9bb   :  { %v762_v40 = vadd.f32 %v1921_v0, %v761_v38 }
 0x9bd   :  { %v1482_v41 = vmul.f32 -1.442695, %v762_v40 }
 0x9bf   :  { %1569 = vpow2.f32 %v1482_v41 }
 0x9c0   :  { %v759_v43 = vpop.f32.mrf.mxu3 }
 0x9c1   :  { %v147_v43 = vld [vmem:[#allocation4 + $0x30] sm:$0xff] }
 0x9c5   :  { %v1570_v45 = vpop.eup %1569 }
 0x9c6   :  { %v766_v46 = vadd.f32 1.0, %v1570_v45  ;;  %v148_v45 = vld [vmem:[#allocation4 + $0x38] sm:$0xff] }
 0x9c8   :  { %1571 = vrcp.f32 %v766_v46  ;;  %v778_v55 = vand.u32 2147483648, %v766_v46  ;;  %vm772_vm4 = vweird.f32 %v766_v46  ;;  %v776_v56 = vand.u32 2147483647, %v766_v46 }
 0x9c9   :  { %1573 = vpow2.f32 %v1485_v3 }
 0x9ca   :  { %v779_v61 = vor.u32 1.1754944e-38, %v778_v55  ;;  %vm777_vm6 = vcmp.eq.f32.partialorder %v776_v56, 8.507059e+37 }
 0x9ce   :  { %v1572_v47 = vpop.eup %1571 }
 0x9cf   :  { %v768_v49 = vmul.f32 %v1572_v47, %v766_v46  ;;  %vm773_vm3 = vweird.f32 %v1572_v47  ;;  %v1574_v5 = vpop.eup %1573  ;;  %v152_v46 = vpack.c.bf16 %v148_v45, %v147_v43 }
 0x9d0   :  { %vm774_vm5 = vmor %vm772_vm4, %vm773_vm3  ;;  %v846_v6 = vadd.f32 1.0, %v1574_v5 }
 0x9d1   :  { %v769_v50 = vsub.f32 1.0, %v768_v49  ;;  %1452 = vmatmul.msk.bf16.gmra.mxu0 %vm169_vm2, %v152_v46 }
 0x9d2   :  { %1575 = vrcp.f32 %v846_v6  ;;  %v858_v13 = vand.u32 2147483648, %v846_v6  ;;  %vm852_vm9 = vweird.f32 %v846_v6  ;;  %v856_v16 = vand.u32 2147483647, %v846_v6 }
 0x9d3   :  { %v770_v51 = vmul.f32 %v1572_v47, %v769_v50 }
 0x9d4   :  { %v859_v18 = vor.u32 1.1754944e-38, %v858_v13  ;;  %vm857_vm11 = vcmp.eq.f32.partialorder %v856_v16, 8.507059e+37 }
 0x9d5   :  { %v771_v54 = vadd.f32 %v1572_v47, %v770_v51 }
 0x9d7   :  { %v775_v60 = vsel %vm774_vm5, %v1572_v47, %v771_v54 }
 0x9d8   :  { %v780_v1 = vsel %vm777_vm6, %v779_v61, %v775_v60  ;;  %v1576_v8 = vpop.eup %1575 }
 0x9d9   :  { %v848_v9 = vmul.f32 %v1576_v8, %v846_v6  ;;  %vm853_vm8 = vweird.f32 %v1576_v8  ;;  %v795_v31 = vsub.f32 1.0, %v780_v1  ;;  %v801_v14 = vmul.f32 %v780_v1, %v1991_v20 }
 0x9da   :  { %vm854_vm10 = vmor %vm852_vm9, %vm853_vm8 }
 0x9db   :  { %v849_v10 = vsub.f32 1.0, %v848_v9 }
 0x9dd   :  { %v850_v11 = vmul.f32 %v1576_v8, %v849_v10 }
 0x9de   :  { %v786_v63 = vpop.permute.xlu1 %785 }
 0x9df   :  { %v788_v2 = vmul.f32 %v786_v63, %v780_v1  ;;  %v851_v12 = vadd.f32 %v1576_v8, %v850_v11 }
 0x9e1   :  { %790 = vrot.lane.b32.xlu0 %v788_v2, %s1760_s30  ;;  %v855_v17 = vsel %vm854_vm10, %v1576_v8, %v851_v12  ;;  %v208_v8 = vadd.f32 %v1878_v19, %v207_v52 }
 0x9e2   :  { %v860_v21 = vsel %vm857_vm11, %v859_v18, %v855_v17 }
 0x9e3   :  { %v874_v36 = vsub.f32 1.0, %v860_v21  ;;  %v880_v38 = vmul.f32 %v860_v21, %v1997_v26 }
 0xa0f   :  { %v865_v4 = vpop.permute.xlu2 %864 }
 0xa10   :  { %v867_v22 = vmul.f32 %v865_v4, %v860_v21 }
 0xa12   :  { %869 = vrot.lane.b32.xlu1 %v867_v22, %s1760_s30 }
 0xa4e   :  { %v2041_v54 = vpop.f32.mrf.mxu0 }
 0xa53   :  { %v791_v24 = vpop.permute.xlu0 %790 }
 0xa54   :  { %v793_v25 = vadd.f32 %v791_v24, %v782_v23 }
 0xa56   :  { %1577 = vtanh.f32 %v793_v25  ;;  %v2043_v55 = vpop.f32.mrf.mxu0 }
 0xa5c   :  { %v1578_v27 = vpop.eup %1577 }
 0xa5d   :  { %797 = vrot.lane.b32.xlu2 %v1578_v27, %s1763_s11 }
 0xa84   :  { %v870_v28 = vpop.permute.xlu1 %869 }
 0xa85   :  { %v872_v29 = vadd.f32 %v870_v28, %v206_v59 }
 0xa87   :  { %1579 = vtanh.f32 %v872_v29 }
 0xa8d   :  { %v1580_v30 = vpop.eup %1579 }
 0xa8e   :  { %876 = vrot.lane.b32.xlu0 %v1580_v30, %s1763_s11 }
 0xab7   :  { %v798_v32 = vpop.permute.xlu2 %797 }
 0xab8   :  { %v800_v33 = vmul.f32 %v798_v32, %v795_v31 }
 0xaba   :  { %v2021_v34 = vadd.f32 %v801_v14, %v800_v33 }
 0xabc   :  { %v822_v35 = vpack.c.bf16 %v2021_v34, %v2021_v34 }
 0xabe   :  { %824 = vrot.lane.b32.xlu1 %v822_v35, %s1763_s11 }
 0xb00   :  { %v877_v37 = vpop.permute.xlu0 %876 }
 0xb01   :  { %v879_v39 = vmul.f32 %v877_v37, %v874_v36 }
 0xb03   :  { %v2027_v40 = vadd.f32 %v880_v38, %v879_v39 }
 0xb05   :  { %v882_v41 = vpack.c.bf16 %v2027_v40, %v2027_v40 }
 0xb07   :  { %884 = vrot.lane.b32.xlu2 %v882_v41, %s1763_s11 }
 0xb30   :  { %v825_v47 = vpop.permute.xlu1 %824 }
 0xb31   :  { %1484 = vmatmul.msk.bf16.vlgmr.msra.gmra.mxu2 %vm220_vm7, %v825_v47 }
 0xb32   :  { %1239 = vmatpush.bf16.msra.mxu2 %v1863_v7 }
 0xb61   :  { %v885_v49 = vpop.permute.xlu2 %884 }
 0xb62   :  { %1486 = vmatmul.msk.bf16.vlgmr.msra.gmra.mxu3 %vm220_vm7, %v885_v49  ;;  %1488 = vmatmul.msk.bf16.vlgmr.msrb.gmra.mxu0 %vm220_vm7, %v885_v49 }
 0xb63   :  { %1259 = vmatpush.bf16.msra.mxu3 %v1884_v44  ;;  %1319 = vmatpush.bf16.msrb.mxu0 %v1891_v48 }
 0xbb4   :  { %v838_v26 = vpop.f32.mrf.mxu2 }
 0xbb5   :  { %v924_v50 = vadd.f32 %v838_v26, %v1912_v58 }
 0xbb7   :  { %926 = vrot.lane.b32.xlu0 %v924_v50, %s1762_s4 }
 0xbbc   :  { %v840_v51 = vpop.f32.mrf.mxu2 }
 0xbdf   :  { %v959_v7 = vpop.f32.mrf.mxu0 }
 0xbe0   :  { %v1003_v56 = vadd.f32 %v959_v7, %v1871_v15  ;;  %v983_v10 = vadd.f32 %v959_v7, %v208_v8 }
 0xbe2   :  { %1005 = vrot.lane.b32.xlu1 %v1003_v56, %s1762_s4  ;;  %v1490_v16 = vmul.f32 -1.442695, %v983_v10 }
 0xbe5   :  { %v898_v59 = vpop.f32.mrf.mxu3 }
 0xbe6   :  { %v902_v48 = vadd.f32 %v898_v59, %v838_v26  ;;  %v923_v36 = vadd.f32 %v898_v59, %v1927_v42 }
 0xbe7   :  { %v961_v44 = vpop.f32.mrf.mxu0 }
 0xbe8   :  { %v903_v61 = vadd.f32 %v1921_v0, %v902_v48 }
 0xbea   :  { %v1487_v62 = vmul.f32 -1.442695, %v903_v61 }
 0xbec   :  { %1581 = vpow2.f32 %v1487_v62 }
 0xbed   :  { %v900_v60 = vpop.f32.mrf.mxu3 }
 0xbf2   :  { %v1582_v63 = vpop.eup %1581 }
 0xbf3   :  { %v907_v1 = vadd.f32 1.0, %v1582_v63 }
 0xbf5   :  { %1583 = vrcp.f32 %v907_v1  ;;  %v919_v11 = vand.u32 2147483648, %v907_v1  ;;  %vm913_vm12 = vweird.f32 %v907_v1  ;;  %v917_v12 = vand.u32 2147483647, %v907_v1 }
 0xbf6   :  { %1585 = vpow2.f32 %v1490_v16 }
 0xbf7   :  { %v920_v17 = vor.u32 1.1754944e-38, %v919_v11  ;;  %vm918_vm14 = vcmp.eq.f32.partialorder %v917_v12, 8.507059e+37 }
 0xbfb   :  { %v1584_v2 = vpop.eup %1583 }
 0xbfc   :  { %v909_v3 = vmul.f32 %v1584_v2, %v907_v1  ;;  %vm914_vm2 = vweird.f32 %v1584_v2  ;;  %v1586_v22 = vpop.eup %1585 }
 0xbfd   :  { %vm915_vm13 = vmor %vm913_vm12, %vm914_vm2  ;;  %v987_v23 = vadd.f32 1.0, %v1586_v22 }
 0xbfe   :  { %v910_v5 = vsub.f32 1.0, %v909_v3 }
 0xbff   :  { %1587 = vrcp.f32 %v987_v23  ;;  %v999_v29 = vand.u32 2147483648, %v987_v23  ;;  %vm993_vm0 = vweird.f32 %v987_v23  ;;  %v997_v30 = vand.u32 2147483647, %v987_v23 }
 0xc00   :  { %v911_v6 = vmul.f32 %v1584_v2, %v910_v5 }
 0xc01   :  { %v1000_v32 = vor.u32 1.1754944e-38, %v999_v29  ;;  %vm998_vm3 = vcmp.eq.f32.partialorder %v997_v30, 8.507059e+37 }
 0xc02   :  { %v912_v9 = vadd.f32 %v1584_v2, %v911_v6 }
 0xc04   :  { %v916_v13 = vsel %vm915_vm13, %v1584_v2, %v912_v9 }
 0xc05   :  { %v921_v4 = vsel %vm918_vm14, %v920_v17, %v916_v13  ;;  %v1588_v19 = vpop.eup %1587 }
 0xc06   :  { %v989_v24 = vmul.f32 %v1588_v19, %v987_v23  ;;  %vm994_vm15 = vweird.f32 %v1588_v19  ;;  %v936_v46 = vsub.f32 1.0, %v921_v4  ;;  %v942_v49 = vmul.f32 %v921_v4, %v2021_v34 }
 0xc07   :  { %vm995_vm1 = vmor %vm993_vm0, %vm994_vm15 }
 0xc08   :  { %v990_v25 = vsub.f32 1.0, %v989_v24 }
 0xc0a   :  { %v991_v27 = vmul.f32 %v1588_v19, %v990_v25 }
 0xc0c   :  { %v992_v28 = vadd.f32 %v1588_v19, %v991_v27  ;;  %v2078_v27 = vld [vmem:[%s2204_s3] ss:$0 sm:$0xff] }
 0xc0e   :  { %v996_v31 = vsel %vm995_vm1, %v1588_v19, %v992_v28  ;;  %v211_v28 = vadd.f32 %v2078_v27, %v2041_v54 }
 0xc0f   :  { %v1001_v14 = vsel %vm998_vm3, %v1000_v32, %v996_v31 }
 0xc10   :  { %v1015_v52 = vsub.f32 1.0, %v1001_v14  ;;  %v1021_v56 = vmul.f32 %v1001_v14, %v2027_v40 }
 0xc29   :  { %v927_v18 = vpop.permute.xlu0 %926 }
 0xc2a   :  { %v929_v21 = vmul.f32 %v927_v18, %v921_v4 }
 0xc2c   :  { %931 = vrot.lane.b32.xlu2 %v929_v21, %s1760_s30 }
 0xc54   :  { %v1006_v33 = vpop.permute.xlu1 %1005 }
 0xc55   :  { %v1008_v35 = vmul.f32 %v1006_v33, %v1001_v14 }
 0xc57   :  { %1010 = vrot.lane.b32.xlu0 %v1008_v35, %s1760_s30 }
 0xc86   :  { %v932_v37 = vpop.permute.xlu2 %931 }
 0xc87   :  { %v934_v38 = vadd.f32 %v932_v37, %v923_v36 }
 0xc89   :  { %1589 = vtanh.f32 %v934_v38 }
 0xc8f   :  { %v1590_v39 = vpop.eup %1589 }
 0xc90   :  { %938 = vrot.lane.b32.xlu1 %v1590_v39, %s1763_s11 }
 0xcc9   :  { %v1011_v41 = vpop.permute.xlu0 %1010 }
 0xcca   :  { %v1013_v43 = vadd.f32 %v1011_v41, %v208_v8 }
 0xccc   :  { %1591 = vtanh.f32 %v1013_v43 }
 0xcd2   :  { %v1592_v45 = vpop.eup %1591 }
 0xcd3   :  { %1017 = vrot.lane.b32.xlu2 %v1592_v45, %s1763_s11 }
 0xd02   :  { %v939_v47 = vpop.permute.xlu1 %938 }
 0xd03   :  { %v941_v26 = vmul.f32 %v939_v47, %v936_v46 }
 0xd05   :  { %v2055_v50 = vadd.f32 %v942_v49, %v941_v26 }
 0xd07   :  { %v963_v51 = vpack.c.bf16 %v2055_v50, %v2055_v50 }
 0xd09   :  { %965 = vrot.lane.b32.xlu0 %v963_v51, %s1763_s11 }
 0xd2d   :  { %v1018_v7 = vpop.permute.xlu2 %1017 }
 0xd2e   :  { %v1020_v59 = vmul.f32 %v1018_v7, %v1015_v52 }
 0xd30   :  { %v2061_v44 = vadd.f32 %v1021_v56, %v1020_v59 }
 0xd32   :  { %v1023_v60 = vpack.c.bf16 %v2061_v44, %v2061_v44 }
 0xd34   :  { %1025 = vrot.lane.b32.xlu1 %v1023_v60, %s1763_s11 }
 0xd7b   :  { %v966_v48 = vpop.permute.xlu0 %965 }
 0xd7c   :  { %1489 = vmatmul.msk.bf16.vlgmr.msrb.gmra.mxu1 %vm220_vm7, %v966_v48 }
 0xda6   :  { %v1026_v61 = vpop.permute.xlu1 %1025 }
 0xda7   :  { %1491 = vmatmul.msk.bf16.vlgmr.msrb.gmra.mxu2 %vm220_vm7, %v1026_v61  ;;  %1493 = vmatmul.msk.bf16.vlgmr.msrb.gmra.mxu3 %vm220_vm7, %v1026_v61 }
 0xdf9   :  { %v979_v62 = vpop.f32.mrf.mxu1 }
 0xdfa   :  { %v1065_v63 = vadd.f32 %v979_v62, %v1912_v58 }
 0xdfc   :  { %1067 = vrot.lane.b32.xlu2 %v1065_v63, %s1762_s4 }
 0xe01   :  { %v981_v40 = vpop.f32.mrf.mxu1 }
 0xe2a   :  { %v1039_v1 = vpop.f32.mrf.mxu2  ;;  %v1100_v2 = vpop.f32.mrf.mxu3 }
 0xe2b   :  { %v1043_v3 = vadd.f32 %v1039_v1, %v979_v62  ;;  %v1144_v5 = vadd.f32 %v1100_v2, %v1871_v15  ;;  %v1124_v29 = vadd.f32 %v1100_v2, %v211_v28  ;;  %v1064_v47 = vadd.f32 %v1039_v1, %v1927_v42 }
 0xe2d   :  { %v1044_v6 = vadd.f32 %v1921_v0, %v1043_v3  ;;  %1146 = vrot.lane.b32.xlu0 %v1144_v5, %s1762_s4  ;;  %v1495_v30 = vmul.f32 -1.442695, %v1124_v29 }
 0xe2f   :  { %v1492_v8 = vmul.f32 -1.442695, %v1044_v6 }
 0xe31   :  { %1593 = vpow2.f32 %v1492_v8 }
 0xe32   :  { %v1041_v9 = vpop.f32.mrf.mxu2  ;;  %v1102_v10 = vpop.f32.mrf.mxu3 }
 0xe37   :  { %v1594_v11 = vpop.eup %1593 }
 0xe38   :  { %v1048_v12 = vadd.f32 1.0, %v1594_v11 }
 0xe3a   :  { %1595 = vrcp.f32 %v1048_v12  ;;  %v1060_v21 = vand.u32 2147483648, %v1048_v12  ;;  %vm1054_vm5 = vweird.f32 %v1048_v12  ;;  %v1058_v22 = vand.u32 2147483647, %v1048_v12 }
 0xe3b   :  { %1597 = vpow2.f32 %v1495_v30 }
 0xe3c   :  { %v1061_v23 = vor.u32 1.1754944e-38, %v1060_v21  ;;  %vm1059_vm8 = vcmp.eq.f32.partialorder %v1058_v22, 8.507059e+37 }
 0xe40   :  { %v1596_v13 = vpop.eup %1595 }
 0xe41   :  { %v1050_v16 = vmul.f32 %v1596_v13, %v1048_v12  ;;  %vm1055_vm4 = vweird.f32 %v1596_v13  ;;  %v1598_v31 = vpop.eup %1597 }
 0xe42   :  { %vm1056_vm6 = vmor %vm1054_vm5, %vm1055_vm4  ;;  %v1128_v32 = vadd.f32 1.0, %v1598_v31 }
 0xe43   :  { %v1051_v17 = vsub.f32 1.0, %v1050_v16  ;;  %v2106_v16 = vld [vmem:[%s2208_s7] ss:$0 sm:$0xff] }
 0xe44   :  { %1599 = vrcp.f32 %v1128_v32  ;;  %v1140_v38 = vand.u32 2147483648, %v1128_v32  ;;  %vm1134_vm10 = vweird.f32 %v1128_v32  ;;  %v1138_v39 = vand.u32 2147483647, %v1128_v32 }
 0xe45   :  { %v1052_v18 = vmul.f32 %v1596_v13, %v1051_v17 }
 0xe46   :  { %v1141_v43 = vor.u32 1.1754944e-38, %v1140_v38  ;;  %vm1139_vm2 = vcmp.eq.f32.partialorder %v1138_v39, 8.507059e+37 }
 0xe47   :  { %v1053_v4 = vadd.f32 %v1596_v13, %v1052_v18 }
 0xe49   :  { %v1057_v0 = vsel %vm1056_vm6, %v1596_v13, %v1053_v4 }
 0xe4a   :  { %v1062_v24 = vsel %vm1059_vm8, %v1061_v23, %v1057_v0  ;;  %v1600_v14 = vpop.eup %1599 }
 0xe4b   :  { %v1130_v33 = vmul.f32 %v1600_v14, %v1128_v32  ;;  %vm1135_vm9 = vweird.f32 %v1600_v14  ;;  %v1077_v59 = vsub.f32 1.0, %v1062_v24  ;;  %v1083_v48 = vmul.f32 %v1062_v24, %v2055_v50 }
 0xe4c   :  { %vm1136_vm11 = vmor %vm1134_vm10, %vm1135_vm9  ;;  %vm1429_vm10 = vcmask 7168  }
 0xe4d   :  { %v1131_v35 = vsub.f32 1.0, %v1130_v33 }
 0xe4f   :  { %v1132_v36 = vmul.f32 %v1600_v14, %v1131_v35 }
 0xe51   :  { %v1133_v37 = vadd.f32 %v1600_v14, %v1132_v36 }
 0xe53   :  { %v1137_v41 = vsel %vm1136_vm11, %v1600_v14, %v1133_v37  ;;  %v213_v37 = vadd.f32 %v2078_v27, %v2043_v55 }
 0xe54   :  { %v1142_v45 = vsel %vm1139_vm2, %v1141_v43, %v1137_v41 }
 0xe55   :  { %v1156_v40 = vsub.f32 1.0, %v1142_v45  ;;  %v1162_v2 = vmul.f32 %v1142_v45, %v2061_v44 }
 0xe56   :  { %v1068_v19 = vpop.permute.xlu2 %1067 }
 0xe57   :  { %v1070_v25 = vmul.f32 %v1068_v19, %v1062_v24 }
 0xe59   :  { %1072 = vrot.lane.b32.xlu1 %v1070_v25, %s1760_s30 }
 0xe9f   :  { %v1147_v54 = vpop.permute.xlu0 %1146 }
 0xea0   :  { %v1149_v46 = vmul.f32 %v1147_v54, %v1142_v45 }
 0xea2   :  { %1151 = vrot.lane.b32.xlu2 %v1149_v46, %s1760_s30 }
 0xecb   :  { %v1073_v49 = vpop.permute.xlu1 %1072 }
 0xecc   :  { %v1075_v26 = vadd.f32 %v1073_v49, %v1064_v47 }
 0xece   :  { %1601 = vtanh.f32 %v1075_v26 }
 0xed4   :  { %v1602_v51 = vpop.eup %1601 }
 0xed5   :  { %1079 = vrot.lane.b32.xlu0 %v1602_v51, %s1763_s11 }
 0xefc   :  { %v1152_v52 = vpop.permute.xlu2 %1151 }
 0xefd   :  { %v1154_v7 = vadd.f32 %v1152_v52, %v211_v28 }
 0xeff   :  { %1603 = vtanh.f32 %v1154_v7 }
 0xf05   :  { %v1604_v56 = vpop.eup %1603 }
 0xf06   :  { %1158 = vrot.lane.b32.xlu1 %v1604_v56, %s1763_s11 }
 0xf47   :  { %v1080_v60 = vpop.permute.xlu0 %1079 }
 0xf48   :  { %v1082_v61 = vmul.f32 %v1080_v60, %v1077_v59 }
 0xf4a   :  { %v2087_v62 = vadd.f32 %v1083_v48, %v1082_v61 }
 0xf4c   :  { %v1104_v63 = vpack.c.bf16 %v2087_v62, %v2087_v62 }
 0xf4e   :  { %1106 = vrot.lane.b32.xlu2 %v1104_v63, %s1763_s11 }
 0xf78   :  { %v1159_v1 = vpop.permute.xlu1 %1158 }
 0xf79   :  { %v1161_v3 = vmul.f32 %v1159_v1, %v1156_v40 }
 0xf7b   :  { %v2093_v5 = vadd.f32 %v1162_v2, %v1161_v3 }
 0xf7d   :  { %v1164_v6 = vpack.c.bf16 %v2093_v5, %v2093_v5 }
 0xf7f   :  { %1166 = vrot.lane.b32.xlu0 %v1164_v6, %s1763_s11 }
 0xfa8   :  { %v1107_v8 = vpop.permute.xlu2 %1106 }
 0xfa9   :  { %1494 = vmatmul.msk.bf16.vlgmr.msra.gmra.mxu0 %vm220_vm7, %v1107_v8 }
 0xff1   :  { %v1167_v9 = vpop.permute.xlu0 %1166 }
 0xff2   :  { %1496 = vmatmul.msk.bf16.vlgmr.msra.gmra.mxu1 %vm220_vm7, %v1167_v9  ;;  %1498 = vmatmul.msk.bf16.vlgmr.msra.gmra.mxu2 %vm220_vm7, %v1167_v9 }
0x1026   :  { %v1120_v10 = vpop.f32.mrf.mxu0 }
0x1027   :  { %v1206_v11 = vadd.f32 %v1120_v10, %v1912_v58 }
0x1029   :  { %1208 = vrot.lane.b32.xlu1 %v1206_v11, %s1762_s4 }
0x102e   :  { %v1122_v44 = vpop.f32.mrf.mxu0 }
0x106f   :  { %v1180_v12 = vpop.f32.mrf.mxu1 }
0x1070   :  { %v1184_v13 = vadd.f32 %v1180_v12, %v1120_v10  ;;  %v1205_v59 = vadd.f32 %v1180_v12, %v1927_v42 }
0x1072   :  { %v1185_v17 = vadd.f32 %v2106_v16, %v1184_v13 }
0x1074   :  { %v1497_v18 = vmul.f32 -1.442695, %v1185_v17 }
0x1075   :  { %v1241_v4 = vpop.f32.mrf.mxu2 }
0x1076   :  { %1605 = vpow2.f32 %v1497_v18  ;;  %v1285_v21 = vadd.f32 %v1241_v4, %v1871_v15  ;;  %v1265_v38 = vadd.f32 %v1241_v4, %v213_v37 }
0x1077   :  { %v1182_v22 = vpop.f32.mrf.mxu1 }
0x1078   :  { %1287 = vrot.lane.b32.xlu2 %v1285_v21, %s1762_s4  ;;  %v1500_v39 = vmul.f32 -1.442695, %v1265_v38 }
0x107c   :  { %v1606_v0 = vpop.eup %1605 }
0x107d   :  { %v1189_v23 = vadd.f32 1.0, %v1606_v0  ;;  %v1243_v19 = vpop.f32.mrf.mxu2 }
0x107f   :  { %1607 = vrcp.f32 %v1189_v23  ;;  %v1201_v31 = vand.u32 2147483648, %v1189_v23  ;;  %vm1195_vm13 = vweird.f32 %v1189_v23  ;;  %v1199_v32 = vand.u32 2147483647, %v1189_v23 }
0x1080   :  { %1609 = vpow2.f32 %v1500_v39 }
0x1081   :  { %v1202_v33 = vor.u32 1.1754944e-38, %v1201_v31  ;;  %vm1200_vm15 = vcmp.eq.f32.partialorder %v1199_v32, 8.507059e+37 }
0x1085   :  { %v1608_v24 = vpop.eup %1607 }
0x1086   :  { %v1191_v25 = vmul.f32 %v1608_v24, %v1189_v23  ;;  %vm1196_vm12 = vweird.f32 %v1608_v24  ;;  %v1610_v41 = vpop.eup %1609 }
0x1087   :  { %vm1197_vm14 = vmor %vm1195_vm13, %vm1196_vm12  ;;  %v1269_v43 = vadd.f32 1.0, %v1610_v41 }
0x1088   :  { %v1192_v28 = vsub.f32 1.0, %v1191_v25 }
0x1089   :  { %1611 = vrcp.f32 %v1269_v43  ;;  %v1281_v26 = vand.u32 2147483648, %v1269_v43  ;;  %vm1275_vm1 = vweird.f32 %v1269_v43  ;;  %v1279_v51 = vand.u32 2147483647, %v1269_v43 }
0x108a   :  { %v1193_v29 = vmul.f32 %v1608_v24, %v1192_v28 }
0x108b   :  { %v1282_v7 = vor.u32 1.1754944e-38, %v1281_v26  ;;  %vm1280_vm4 = vcmp.eq.f32.partialorder %v1279_v51, 8.507059e+37 }
0x108c   :  { %v1194_v30 = vadd.f32 %v1608_v24, %v1193_v29 }
0x108e   :  { %v1198_v14 = vsel %vm1197_vm14, %v1608_v24, %v1194_v30 }
0x108f   :  { %v1203_v35 = vsel %vm1200_vm15, %v1202_v33, %v1198_v14  ;;  %v1612_v54 = vpop.eup %1611 }
0x1090   :  { %v1271_v45 = vmul.f32 %v1612_v54, %v1269_v43  ;;  %vm1276_vm0 = vweird.f32 %v1612_v54  ;;  %v1218_v2 = vsub.f32 1.0, %v1203_v35  ;;  %v1224_v6 = vmul.f32 %v1203_v35, %v2087_v62 }
0x1091   :  { %vm1277_vm3 = vmor %vm1275_vm1, %vm1276_vm0 }
0x1092   :  { %v1272_v46 = vsub.f32 1.0, %v1271_v45 }
0x1094   :  { %v1273_v47 = vmul.f32 %v1612_v54, %v1272_v46 }
0x1096   :  { %v1274_v49 = vadd.f32 %v1612_v54, %v1273_v47 }
0x1098   :  { %v1278_v52 = vsel %vm1277_vm3, %v1612_v54, %v1274_v49 }
0x1099   :  { %v1283_v27 = vsel %vm1280_vm4, %v1282_v7, %v1278_v52 }
0x109a   :  { %v1297_v11 = vsub.f32 1.0, %v1283_v27  ;;  %v1303_v12 = vmul.f32 %v1283_v27, %v2093_v5 }
0x109b   :  { %v1209_v15 = vpop.permute.xlu1 %1208 }
0x109c   :  { %v1211_v36 = vmul.f32 %v1209_v15, %v1203_v35 }
0x109e   :  { %1213 = vrot.lane.b32.xlu0 %v1211_v36, %s1760_s30 }
0x10d2   :  { %v1288_v55 = vpop.permute.xlu2 %1287 }
0x10d3   :  { %v1290_v56 = vmul.f32 %v1288_v55, %v1283_v27 }
0x10d5   :  { %1292 = vrot.lane.b32.xlu1 %v1290_v56, %s1760_s30 }
0x1110   :  { %v1214_v60 = vpop.permute.xlu0 %1213 }
0x1111   :  { %v1216_v48 = vadd.f32 %v1214_v60, %v1205_v59 }
0x1113   :  { %1613 = vtanh.f32 %v1216_v48 }
0x1119   :  { %v1614_v61 = vpop.eup %1613 }
0x111a   :  { %1220 = vrot.lane.b32.xlu2 %v1614_v61, %s1763_s11 }
0x1147   :  { %v1293_v63 = vpop.permute.xlu1 %1292 }
0x1148   :  { %v1295_v40 = vadd.f32 %v1293_v63, %v213_v37 }
0x114a   :  { %1615 = vtanh.f32 %v1295_v40 }
0x1150   :  { %v1616_v1 = vpop.eup %1615 }
0x1151   :  { %1299 = vrot.lane.b32.xlu0 %v1616_v1, %s1763_s11 }
0x1174   :  { %v1221_v3 = vpop.permute.xlu2 %1220 }
0x1175   :  { %v1223_v8 = vmul.f32 %v1221_v3, %v1218_v2 }
0x1177   :  { %v2119_v9 = vadd.f32 %v1224_v6, %v1223_v8 }
0x1179   :  { %v1245_v10 = vpack.c.bf16 %v2119_v9, %v2119_v9 }
0x117b   :  { %1247 = vrot.lane.b32.xlu1 %v1245_v10, %s1763_s11  ;;  %v1526_v10 = vld [vmem:[#allocation3] ss:$0 sm:$0xff] }
0x11c3   :  { %v1300_v44 = vpop.permute.xlu0 %1299 }
0x11c4   :  { %v1302_v13 = vmul.f32 %v1300_v44, %v1297_v11 }
0x11c6   :  { %v1304_v17 = vadd.f32 %v1303_v12, %v1302_v13 }
0x11c8   :  { %v1305_v18 = vpack.c.bf16 %v1304_v17, %v1304_v17 }
0x11ca   :  { %1307 = vrot.lane.b32.xlu2 %v1305_v18, %s1763_s11 }
0x11ed   :  { %v1248_v4 = vpop.permute.xlu1 %1247 }
0x11ee   :  { %1499 = vmatmul.msk.bf16.vlgmr.msra.gmra.mxu3 %vm220_vm7, %v1248_v4 }
0x1224   :  { %v1308_v21 = vpop.permute.xlu2 %1307 }
0x1225   :  { %1501 = vmatmul.msk.bf16.vlgmr.msrb.gmra.mxu0 %vm220_vm7, %v1308_v21 }
0x1271   :  { %v1261_v22 = vpop.f32.mrf.mxu3 }
0x1272   :  { %v1347_v0 = vadd.f32 %v1261_v22, %v1912_v58 }
0x1274   :  { %1349 = vrot.lane.b32.xlu0 %v1347_v0, %s1762_s4 }
0x1279   :  { %v1263_v23 = vpop.f32.mrf.mxu3 }
0x127c   :  { %382 = vrot.lane.b32.xlu0 %v1932_v57, %s1763_s11 }
0x1284   :  { %804 = vrot.lane.b32.xlu0 %v2021_v34, %s1763_s11 }
0x128c   :  { %1227 = vrot.lane.b32.xlu0 %v2119_v9, %s1763_s11 }
0x12a2   :  { %v1321_v5 = vpop.f32.mrf.mxu0 }
0x12a3   :  { %v1325_v24 = vadd.f32 %v1321_v5, %v1261_v22  ;;  %v1346_v43 = vadd.f32 %v1321_v5, %v1927_v42 }
0x12a5   :  { %v1326_v25 = vadd.f32 %v2106_v16, %v1325_v24 }
0x12a7   :  { %v1502_v28 = vmul.f32 -1.442695, %v1326_v25 }
0x12a9   :  { %1617 = vpow2.f32 %v1502_v28 }
0x12aa   :  { %v1323_v19 = vpop.f32.mrf.mxu0 }
0x12af   :  { %v1618_v58 = vpop.eup %1617 }
0x12b0   :  { %v1330_v29 = vadd.f32 1.0, %v1618_v58 }
0x12b2   :  { %1619 = vrcp.f32 %v1330_v29  ;;  %v1342_v34 = vand.u32 2147483648, %v1330_v29  ;;  %vm1336_vm6 = vweird.f32 %v1330_v29  ;;  %v1340_v33 = vand.u32 2147483647, %v1330_v29 }
0x12b4   :  { %v1343_v35 = vor.u32 1.1754944e-38, %v1342_v34  ;;  %vm1341_vm9 = vcmp.eq.f32.partialorder %v1340_v33, 8.507059e+37 }
0x12b8   :  { %v1620_v30 = vpop.eup %1619 }
0x12b9   :  { %v1332_v31 = vmul.f32 %v1620_v30, %v1330_v29  ;;  %vm1337_vm5 = vweird.f32 %v1620_v30 }
0x12ba   :  { %vm1338_vm8 = vmor %vm1336_vm6, %vm1337_vm5 }
0x12bb   :  { %v1333_v32 = vsub.f32 1.0, %v1332_v31 }
0x12bd   :  { %v1334_v57 = vmul.f32 %v1620_v30, %v1333_v32 }
0x12bf   :  { %v1335_v14 = vadd.f32 %v1620_v30, %v1334_v57 }
0x12c1   :  { %v1339_v15 = vsel %vm1338_vm8, %v1620_v30, %v1335_v14 }
0x12c2   :  { %v1344_v36 = vsel %vm1341_vm9, %v1343_v35, %v1339_v15 }
0x12c3   :  { %v1359_v48 = vsub.f32 1.0, %v1344_v36  ;;  %v1365_v63 = vmul.f32 %v1344_v36, %v2119_v9 }
0x12e6   :  { %v1350_v16 = vpop.permute.xlu0 %1349 }
0x12e7   :  { %v1352_v37 = vmul.f32 %v1350_v16, %v1344_v36 }
0x12e9   :  { %1354 = vrot.lane.b32.xlu1 %v1352_v37, %s1760_s30 }
0x12ee   :  { %v383_v38 = vpop.permute.xlu0 %382 }
0x12ef   :  { %385 = vst.msk [vmem:[#allocation2] sm:$0xff] %vm220_vm7, %v383_v38 }
0x12f1   :  { %522 = vrot.lane.b32.xlu1 %v1962_v53, %s1763_s11  ;;  %v1525_v53 = vld [vmem:[%s2211_s10] ss:$0 sm:$0xff] }
0x12f6   :  { %v805_v39 = vpop.permute.xlu0 %804  ;;  %v1373_v51 = vld [vmem:[#allocation2] sm:$0xff] }
0x12f7   :  { %808 = vst.msk [vmem:[#allocation2 + $0x18] sm:$0xff] %vm220_vm7, %v805_v39  ;;  %v1385_v52 = vmul.f32 %v1525_v53, %v1373_v51 }
0x12f9   :  { %945 = vrot.lane.b32.xlu1 %v2055_v50, %s1763_s11  ;;  %v1393_v7 = vsel %vm220_vm7, %v1385_v52, 0.0 }
0x12fe   :  { %v1228_v41 = vpop.permute.xlu0 %1227  ;;  %v1376_v55 = vld [vmem:[#allocation2 + $0x18] sm:$0xff] }
0x12ff   :  { %1231 = vst.msk [vmem:[#allocation2 + $0x30] sm:$0xff] %vm220_vm7, %v1228_v41  ;;  %v1388_v27 = vmul.f32 %v1525_v53, %v1376_v55 }
0x1301   :  { %v1402_v56 = vsel %vm220_vm7, %v1388_v27, 0.0 }
0x1306   :  { %v1379_v17 = vld [vmem:[#allocation2 + $0x30] sm:$0xff] }
0x1307   :  { %v1391_v18 = vmul.f32 %v1525_v53, %v1379_v17 }
0x1309   :  { %v1411_v4 = vsel %vm220_vm7, %v1391_v18, 0.0 }
0x135b   :  { %v1355_v54 = vpop.permute.xlu1 %1354 }
0x135c   :  { %v1357_v45 = vadd.f32 %v1355_v54, %v1346_v43 }
0x135e   :  { %1621 = vtanh.f32 %v1357_v45 }
0x1363   :  { %v523_v46 = vpop.permute.xlu1 %522 }
0x1364   :  { %v1622_v47 = vpop.eup %1621  ;;  %526 = vst.msk [vmem:[#allocation2 + $0x8] sm:$0xff] %vm220_vm7, %v523_v46 }
0x1365   :  { %1361 = vrot.lane.b32.xlu2 %v1622_v47, %s1763_s11 }
0x136b   :  { %v946_v49 = vpop.permute.xlu1 %945  ;;  %v1374_v50 = vld [vmem:[#allocation2 + $0x8] sm:$0xff] }
0x136c   :  { %949 = vst.msk [vmem:[#allocation2 + $0x20] sm:$0xff] %vm220_vm7, %v946_v49  ;;  %v1386_v26 = vmul.f32 %v1525_v53, %v1374_v50 }
0x136d   :  { %663 = vrot.lane.b32.xlu2 %v1991_v20, %s1763_s11 }
0x136e   :  { %v1396_v42 = vsel %vm220_vm7, %v1386_v26, 0.0 }
0x136f   :  { %1397 = vadd.xlane.f32.xlu0 %v1396_v42 }
0x1373   :  { %v1377_v59 = vld [vmem:[#allocation2 + $0x20] sm:$0xff] }
0x1374   :  { %v1389_v60 = vmul.f32 %v1525_v53, %v1377_v59 }
0x1375   :  { %1086 = vrot.lane.b32.xlu2 %v2087_v62, %s1763_s11 }
0x1376   :  { %v1405_v20 = vsel %vm220_vm7, %v1389_v60, 0.0 }
0x139e   :  { %1394 = vadd.xlane.f32.xlu2 %v1393_v7 }
0x13a6   :  { %1403 = vadd.xlane.f32.xlu2 %v1402_v56 }
0x13ae   :  { %1406 = vadd.xlane.f32.xlu2 %v1405_v20 }
0x13bf   :  { %v1362_v61 = vpop.permute.xlu2 %1361 }
0x13c0   :  { %v1364_v62 = vmul.f32 %v1362_v61, %v1359_v48 }
0x13c2   :  { %v1366_v40 = vadd.f32 %v1365_v63, %v1364_v62 }
0x13c4   :  { %1368 = vrot.lane.b32.xlu1 %v1366_v40, %s1763_s11 }
0x13c7   :  { %v664_v1 = vpop.permute.xlu2 %663 }
0x13c8   :  { %667 = vst.msk [vmem:[#allocation2 + $0x10] sm:$0xff] %vm220_vm7, %v664_v1 }
0x13cf   :  { %v1087_v2 = vpop.permute.xlu2 %1086  ;;  %v1375_v9 = vld [vmem:[#allocation2 + $0x10] sm:$0xff] }
0x13d0   :  { %1090 = vst.msk [vmem:[#allocation2 + $0x28] sm:$0xff] %vm220_vm7, %v1087_v2  ;;  %v1387_v12 = vmul.f32 %v1525_v53, %v1375_v9 }
0x13d2   :  { %v1399_v13 = vsel %vm220_vm7, %v1387_v12, 0.0 }
0x13d7   :  { %v1378_v3 = vld [vmem:[#allocation2 + $0x28] sm:$0xff] }
0x13d8   :  { %v1390_v6 = vmul.f32 %v1525_v53, %v1378_v3 }
0x13da   :  { %v1408_v8 = vsel %vm220_vm7, %v1390_v6, 0.0 }
0x13db   :  { %1409 = vadd.xlane.f32.xlu0 %v1408_v8 }
0x13e2   :  { %v1398_v11 = vpop.xlane.xlu0 %1397 }
0x13e3   :  { %v1422_v44 = vadd.f32 %v1526_v10, %v1398_v11 }
0x13e5   :  { %1431 = vst.msk [vmem:[%s2213_s12 + $0x8] sm:$0xff] %vm1429_vm10, %v1422_v44 }
0x13ee   :  { %1400 = vadd.xlane.f32.xlu1 %v1399_v13 }
0x13f6   :  { %1412 = vadd.xlane.f32.xlu1 %v1411_v4 }
0x1411   :  { %v1395_v21 = vpop.xlane.xlu2 %1394 }
0x1412   :  { %v1421_v22 = vadd.f32 %v1526_v10, %v1395_v21 }
0x1414   :  { %1430 = vst.msk [vmem:[%s2213_s12] sm:$0xff] %vm1429_vm10, %v1421_v22 }
0x1419   :  { %v1404_v0 = vpop.xlane.xlu2 %1403 }
0x141a   :  { %v1424_v23 = vadd.f32 %v1526_v10, %v1404_v0 }
0x141c   :  { %1433 = vst.msk [vmem:[%s2213_s12 + $0x18] sm:$0xff] %vm1429_vm10, %v1424_v23 }
0x1421   :  { %v1407_v5 = vpop.xlane.xlu2 %1406 }
0x1422   :  { %v1425_v19 = vadd.f32 %v1526_v10, %v1407_v5 }
0x1424   :  { %1434 = vst.msk [vmem:[%s2213_s12 + $0x20] sm:$0xff] %vm1429_vm10, %v1425_v19 }
0x1436   :  { %v1369_v24 = vpop.permute.xlu1 %1368 }
0x1437   :  { %1372 = vst.msk [vmem:[#allocation2 + $0x38] sm:$0xff] %vm220_vm7, %v1369_v24 }
0x143e   :  { %v1380_v25 = vld [vmem:[#allocation2 + $0x38] sm:$0xff] }
0x143f   :  { %v1392_v28 = vmul.f32 %v1525_v53, %v1380_v25 }
0x1441   :  { %v1414_v58 = vsel %vm220_vm7, %v1392_v28, 0.0 }
0x1442   :  { %1415 = vadd.xlane.f32.xlu2 %v1414_v58 }
0x144e   :  { %v1410_v29 = vpop.xlane.xlu0 %1409 }
0x144f   :  { %v1426_v30 = vadd.f32 %v1526_v10, %v1410_v29 }
0x1451   :  { %1435 = vst.msk [vmem:[%s2213_s12 + $0x28] sm:$0xff] %vm1429_vm10, %v1426_v30 }
0x1461   :  { %v1401_v31 = vpop.xlane.xlu1 %1400 }
0x1462   :  { %v1423_v32 = vadd.f32 %v1526_v10, %v1401_v31 }
0x1464   :  { %1432 = vst.msk [vmem:[%s2213_s12 + $0x10] sm:$0xff] %vm1429_vm10, %v1423_v32 }
0x1469   :  { %v1413_v57 = vpop.xlane.xlu1 %1412 }
0x146a   :  { %v1427_v14 = vadd.f32 %v1526_v10, %v1413_v57 }
0x146c   :  { %1436 = vst.msk [vmem:[%s2213_s12 + $0x30] sm:$0xff] %vm1429_vm10, %v1427_v14 }
0x14b5   :  { %v1416_v34 = vpop.xlane.xlu2 %1415 }
0x14b6   :  { %v1428_v33 = vadd.f32 %v1526_v10, %v1416_v34 }
0x14b8   :  { %1437 = vst.msk [vmem:[%s2213_s12 + $0x38] sm:$0xff] %vm1429_vm10, %v1428_v33 }
0x14b9   :  { %1442 = vsyncpa [#allocation5], 1 }
0x14ba   :  { %1443 = vsyncpa [#allocation7], 1 }
0x14bb   :  { %1444 = vsyncpa [#allocation10], 1 }

</bundles_post_ra>
